<compile_context>
chip_gen: v7x
topology: tpu7x:2x2x1
jax: 0.10.0
libtpu: 0.0.40
codegen_flags: <defaults>
</compile_context>

<pallas_src>
import functools

import jax
import jax.numpy as jnp
from jax import lax
from jax.experimental import pallas as pl
from jax.experimental.pallas import tpu as pltpu

KSIZE = 7
PAD = KSIZE // 2


def _cbam_kernel(shifts, C, HW, SB, x_ref, w1_ref, w2_ref, wstk_ref, bsa_ref,
                 out_ref, ca_ref):
    """One grid step over a (Bblk, C, HW) batch-block of the NCHW-flat input.

    shifts : static tuple of lane-roll amounts, one per 7x7 tap.
    SB     : batch sub-chunk (<= 8 sublanes) for the spatial path so the conv
             accumulator stays register-resident.
    """
    Bblk = x_ref.shape[0]
    nchunks = Bblk // SB
    nt = len(shifts)

    # ---------------- Channel attention (whole block) ----------------
    # Fused max+sum over the HW lane axis: one read pass over the block.
    if HW % 128 == 0 and HW > 128:
        m = x_ref[:, :, pl.ds(0, 128)]
        s = m
        for p0 in range(128, HW, 128):
            blk = x_ref[:, :, pl.ds(p0, 128)]
            m = jnp.maximum(m, blk)
            s = s + blk
    else:
        m = x_ref[...]
        s = m
    ch_max = jnp.max(m, axis=-1)                      # (Bblk, C)
    ch_avg = jnp.sum(s, axis=-1) * (1.0 / HW)         # (Bblk, C)

    # Shared SE MLP on stacked [max; avg] stats: two small MXU dots per block.
    stats = jnp.concatenate([ch_max, ch_avg], axis=0)              # (2*Bblk, C)
    h = jnp.maximum(
        jnp.dot(stats, w1_ref[...], preferred_element_type=jnp.float32), 0.0)
    logits = jnp.dot(h, w2_ref[...], preferred_element_type=jnp.float32)
    ca = jax.nn.sigmoid(logits[:Bblk] + logits[Bblk:])             # (Bblk, C)
    ca_ref[...] = ca.reshape(nchunks, SB, C)

    bsa = bsa_ref[0]
    inv_c = 1.0 / C

    # -------- Spatial attention + residual, per batch sub-chunk --------
    def chunk_body(ci, b0):
        xc = x_ref[pl.ds(b0, SB), :, :]               # (SB, C, HW)
        cac = ca_ref[ci]                              # (SB, C)
        o1 = xc * cac[:, :, None]                     # (SB, C, HW) lane-dense

        # Fused max+sum over the C (sublane) axis: one pass over o1.
        if C % 8 == 0 and C > 8:
            mc = o1[:, 0:8, :]
            sc = mc
            for c0 in range(8, C, 8):
                blk = o1[:, c0:c0 + 8, :]
                mc = jnp.maximum(mc, blk)
                sc = sc + blk
        else:
            mc = o1
            sc = o1
        sp_max = jnp.max(mc, axis=1)                  # (SB, HW)
        sp_avg = jnp.sum(sc, axis=1) * inv_c          # (SB, HW)

        # 7x7 conv in the flat-HW layout.  Per tap: one constant lane roll
        # (XLU) + one FMA against the border-masked, pre-broadcast weight slab
        # (max-map rows on sublanes [0,SB), avg-map rows on [SB,2*SB)).
        # acc is (2*SB, HW) -> register-resident.
        stk = jnp.concatenate([sp_max, sp_avg], axis=0)            # (2*SB, HW)
        acc = jnp.zeros((2 * SB, HW), jnp.float32)
        for t in range(nt):
            sh = shifts[t]
            rolled = pltpu.roll(stk, sh, axis=1) if sh else stk
            acc = acc + rolled * wstk_ref[t]
        sa = jax.nn.sigmoid(acc[0:SB] + acc[SB:2 * SB] + bsa)      # (SB, HW)

        # out = out1 * sa + residual   (lane-dense store, HW on lanes)
        out_ref[pl.ds(b0, SB), :, :] = o1 * sa[:, None, :] + xc

    if nchunks <= 4:
        for ci in range(nchunks):
            chunk_body(ci, ci * SB)
    else:
        def body(i, carry):
            chunk_body(i, pl.multiple_of(i * SB, SB))
            return carry
        lax.fori_loop(0, nchunks, body, 0)


def _vmem_capacity_bytes():
    try:
        return int(pltpu.get_tpu_info().vmem_capacity_bytes)
    except Exception:
        return 64 << 20       # conservative default (v7x per-TC VMEM)


def _pick_block_b(B, per_batch_bytes, vmem_cap, fixed_bytes):
    """Largest batch block that (a) fits the per-generation VMEM budget
    (~8 MiB blocks on 128 MiB chips, ~4 MiB on 64 MiB chips), (b) keeps >= 4
    grid steps when B allows (2 TensorCores x >= 2 pipelined steps), (c)
    divides B, and (d) is <= 8 or a multiple of 8 (clean sub-chunking)."""
    target = (8 << 20) if vmem_cap >= (96 << 20) else (4 << 20)
    # Live VMEM ~ 2x double-buffered input block + 2x output block + in-kernel
    # temporaries (out1 chunk, reduction partials) + fixed weight slab.
    budget = int(vmem_cap * 0.6) - fixed_bytes
    target = min(target, max(budget // 8, per_batch_bytes))
    cap = max(1, target // max(per_batch_bytes, 1))
    if B >= 4:
        cap = min(cap, B // 4)
    elif B >= 2:
        cap = min(cap, B // 2)
    best = 1
    for d in range(1, min(cap, B) + 1):
        if B % d == 0 and (d <= 8 or d % 8 == 0):
            best = d
    return best


@jax.jit
def cbam_pallas(x_nchw, w1, w2, wsa, bsa):
    """CBAM forward.  x_nchw: (B, C, H, W) float32 (PyTorch convention)."""
    B, C, H, W = x_nchw.shape
    Cr = w1.shape[1]
    HW = H * W
    nt = KSIZE * KSIZE

    # Free reshape (no transpose, no extra HBM pass): channels stay on the
    # sublane axis, the H*W pixels collapse into the lane axis.
    # NOTE: H*W multiple of 128 keeps every store full-width; other sizes are
    # still correct, just partially masked.
    x = x_nchw.reshape(B, C, HW).astype(jnp.float32)

    vmem_cap = _vmem_capacity_bytes()
    per_b = C * HW * 4
    wstk_bytes_bound = nt * 2 * 8 * HW * 4            # SB <= 8 upper bound
    block_b = _pick_block_b(B, per_b, vmem_cap, wstk_bytes_bound)
    SB = block_b if block_b <= 8 else 8
    nchunks = block_b // SB
    grid = (B // block_b,)

    # ---- host-precomputed spatial-conv tables ------------------------------
    # For every tap (kh, kw): the flat lane shift and a border-masked weight
    # row (tap weight where the source pixel is in-bounds, 0 on the zero-pad
    # border).  Pre-broadcast to the (2*SB, HW) chunk layout so the 49-tap
    # loop needs no broadcast_in_dim at all.
    hh = jnp.arange(H)
    ww = jnp.arange(W)
    shifts = []
    wm_rows = []
    wa_rows = []
    for kh in range(KSIZE):
        for kw in range(KSIZE):
            dh = kh - PAD
            dw = kw - PAD
            valid = (((hh + dh) >= 0) & ((hh + dh) < H))[:, None] & \
                    (((ww + dw) >= 0) & ((ww + dw) < W))[None, :]
            valid = valid.reshape(HW).astype(jnp.float32)
            wm_rows.append(valid * wsa[0, kh, kw])
            wa_rows.append(valid * wsa[1, kh, kw])
            shifts.append(int((-(dh * W + dw)) % HW))
    wm = jnp.stack(wm_rows)                                        # (nt, HW)
    wa = jnp.stack(wa_rows)                                        # (nt, HW)
    wstk = jnp.concatenate(
        [jnp.broadcast_to(wm[:, None, :], (nt, SB, HW)),
         jnp.broadcast_to(wa[:, None, :], (nt, SB, HW))], axis=1)  # (nt,2SB,HW)
    wstk_bytes = nt * 2 * SB * HW * 4

    block_bytes = block_b * per_b
    vmem_limit = int(min(int(vmem_cap * 0.85),
                         max(8 * block_bytes + 2 * wstk_bytes + (8 << 20),
                             32 << 20)))

    kernel = functools.partial(_cbam_kernel, tuple(shifts), C, HW, SB)

    out = pl.pallas_call(
        kernel,
        out_shape=jax.ShapeDtypeStruct((B, C, HW), jnp.float32),
        grid_spec=pltpu.PrefetchScalarGridSpec(
            num_scalar_prefetch=0,
            grid=grid,
            in_specs=[
                pl.BlockSpec((block_b, C, HW), lambda b: (b, 0, 0)),
                pl.BlockSpec((C, Cr), lambda b: (0, 0)),
                pl.BlockSpec((Cr, C), lambda b: (0, 0)),
                pl.BlockSpec((nt, 2 * SB, HW), lambda b: (0, 0, 0)),
                pl.BlockSpec(memory_space=pltpu.MemorySpace.SMEM),   # bsa (1,)
            ],
            out_specs=pl.BlockSpec((block_b, C, HW), lambda b: (b, 0, 0)),
            scratch_shapes=[
                pltpu.VMEM((nchunks, SB, C), jnp.float32),           # ca
            ],
        ),
        compiler_params=pltpu.CompilerParams(
            dimension_semantics=("parallel",),
            vmem_limit_bytes=vmem_limit),
    )(x, w1.astype(jnp.float32), w2.astype(jnp.float32), wstk,
      bsa.astype(jnp.float32))

    return out.reshape(B, C, H, W)


def cbam_reference(x_nchw, w1, w2, wsa, bsa):
    """Pure-JAX reference with identical semantics (for verification)."""
    B, C, H, W = x_nchw.shape
    x = jnp.transpose(x_nchw, (0, 2, 3, 1))        # NHWC
    ch_max = jnp.max(x, axis=(1, 2))               # (B, C)
    ch_avg = jnp.mean(x, axis=(1, 2))

    def se(v):
        return jnp.maximum(v @ w1, 0.0) @ w2

    ca = jax.nn.sigmoid(se(ch_max) + se(ch_avg))   # (B, C)
    out1 = x * ca[:, None, None, :]

    sp_max = jnp.max(out1, axis=-1)                # (B, H, W)
    sp_avg = jnp.mean(out1, axis=-1)
    sp = jnp.stack([sp_max, sp_avg], axis=1)       # (B, 2, H, W)
    sp_pad = jnp.pad(sp, ((0, 0), (0, 0), (PAD, PAD), (PAD, PAD)))
    acc = jnp.zeros((B, H, W), jnp.float32) + bsa[0]
    for ci in range(2):
        for kh in range(KSIZE):
            for kw in range(KSIZE):
                acc = acc + wsa[ci, kh, kw] * sp_pad[:, ci, kh:kh + H, kw:kw + W]
    sa = jax.nn.sigmoid(acc)
    out2 = out1 * sa[..., None]
    return jnp.transpose(out2 + x, (0, 3, 1, 2))


if __name__ == "__main__":
    # Small, CBAM-consistent shapes: B=2, C=32, H=W=16, reduction=4 -> Cr=8.
    B, C, H, W = 2, 32, 16, 16
    reduction = 4
    Cr = C // reduction

    key = jax.random.PRNGKey(0)
    kx, k1, k2, k3, k4 = jax.random.split(key, 5)
    x = jax.random.normal(kx, (B, C, H, W), jnp.float32)
    w1 = jax.random.normal(k1, (C, Cr), jnp.float32) * 0.1
    w2 = jax.random.normal(k2, (Cr, C), jnp.float32) * 0.1
    wsa = jax.random.normal(k3, (2, KSIZE, KSIZE), jnp.float32) * 0.1
    bsa = jax.random.normal(k4, (1,), jnp.float32) * 0.1

    out = jax.block_until_ready(cbam_pallas(x, w1, w2, wsa, bsa))
    ref = jax.block_until_ready(cbam_reference(x, w1, w2, wsa, bsa))

    assert out.shape == (B, C, H, W)
    err = float(jnp.max(jnp.abs(out - ref)))
    assert err < 1e-4, f"max abs diff {err}"
    print("KERNEL_OK")
</pallas_src>

<mosaic_0001>
module attributes {stable_mosaic.version = 11 : i64} {
  func.func @_cbam_kernel(%arg0: i32, %arg1: memref<1x32x256xf32, #tpu.memory_space<vmem>>, %arg2: memref<32x8xf32, #tpu.memory_space<vmem>>, %arg3: memref<8x32xf32, #tpu.memory_space<vmem>>, %arg4: memref<49x2x256xf32, #tpu.memory_space<vmem>>, %arg5: memref<1xf32, #tpu.memory_space<smem>>, %arg6: memref<1x32x256xf32, #tpu.memory_space<vmem>>, %arg7: memref<1x1x32xf32, #tpu.memory_space<vmem>>) attributes {dimension_semantics = [#tpu.dimension_semantics<parallel>], iteration_bounds = array<i64: 2>, scalar_prefetch = 0 : i64, scratch_operands = 1 : i64, tpu.core_type = #tpu.core_type<tc>, window_params = [{transform_indices = @transform_0, window_bounds = array<i64: 1, 32, 256>}, {pipeline_mode = #tpu.pipeline_mode<synchronous>, transform_indices = @transform_1, window_bounds = array<i64: 32, 8>}, {pipeline_mode = #tpu.pipeline_mode<synchronous>, transform_indices = @transform_2, window_bounds = array<i64: 8, 32>}, {pipeline_mode = #tpu.pipeline_mode<synchronous>, transform_indices = @transform_3, window_bounds = array<i64: 49, 2, 256>}, {transform_indices = @transform_4, window_bounds = array<i64: 1>}, {transform_indices = @transform_5, window_bounds = array<i64: 1, 32, 256>}]} {
    %c0 = arith.constant 0 : index
    %c0_0 = arith.constant 0 : index
    %c0_1 = arith.constant 0 : index
    %0 = vector.load %arg1[%c0, %c0_0, %c0_1] : memref<1x32x256xf32, #tpu.memory_space<vmem>>, vector<1x32x128xf32>
    %c0_2 = arith.constant 0 : index
    %c0_3 = arith.constant 0 : index
    %c128 = arith.constant 128 : index
    %1 = vector.load %arg1[%c0_2, %c0_3, %c128] : memref<1x32x256xf32, #tpu.memory_space<vmem>>, vector<1x32x128xf32>
    %2 = arith.maximumf %0, %1 : vector<1x32x128xf32>
    %3 = arith.addf %0, %1 : vector<1x32x128xf32>
    %cst = arith.constant dense<0xFF800000> : vector<1x32xf32>
    %4 = vector.multi_reduction <maximumf>, %2, %cst [2] : vector<1x32x128xf32> to vector<1x32xf32>
    %cst_4 = arith.constant dense<0.000000e+00> : vector<1x32xf32>
    %5 = vector.multi_reduction <add>, %3, %cst_4 [2] : vector<1x32x128xf32> to vector<1x32xf32>
    %cst_5 = arith.constant 3.906250e-03 : f32
    %6 = vector.broadcast %cst_5 : f32 to vector<1x32xf32>
    %7 = arith.mulf %5, %6 : vector<1x32xf32>
    %8 = tpu.concatenate %4, %7 in 0 : vector<1x32xf32>, vector<1x32xf32> -> vector<2x32xf32>
    %c0_6 = arith.constant 0 : index
    %c0_7 = arith.constant 0 : index
    %9 = vector.load %arg2[%c0_6, %c0_7] : memref<32x8xf32, #tpu.memory_space<vmem>>, vector<32x8xf32>
    %cst_8 = arith.constant dense<0.000000e+00> : vector<2x8xf32>
    %10 = tpu.matmul %8, %9, %cst_8 {dimension_numbers = #tpu.dot_dimension_numbers<[1], [0], [0], [1], [0, 0, 1, 1], [], []>} : vector<2x32xf32>, vector<32x8xf32>, vector<2x8xf32> -> vector<2x8xf32>
    %cst_9 = arith.constant 0.000000e+00 : f32
    %11 = vector.broadcast %cst_9 : f32 to vector<2x8xf32>
    %12 = arith.maximumf %10, %11 : vector<2x8xf32>
    %c0_10 = arith.constant 0 : index
    %c0_11 = arith.constant 0 : index
    %13 = vector.load %arg3[%c0_10, %c0_11] : memref<8x32xf32, #tpu.memory_space<vmem>>, vector<8x32xf32>
    %cst_12 = arith.constant dense<0.000000e+00> : vector<2x32xf32>
    %14 = tpu.matmul %12, %13, %cst_12 {dimension_numbers = #tpu.dot_dimension_numbers<[1], [0], [0], [1], [0, 0, 1, 1], [], []>} : vector<2x8xf32>, vector<8x32xf32>, vector<2x32xf32> -> vector<2x32xf32>
    %15 = vector.extract_strided_slice %14 {offsets = [0, 0], sizes = [1, 32], strides = [1, 1]} : vector<2x32xf32> to vector<1x32xf32>
    %16 = vector.extract_strided_slice %14 {offsets = [1, 0], sizes = [1, 32], strides = [1, 1]} : vector<2x32xf32> to vector<1x32xf32>
    %17 = arith.addf %15, %16 : vector<1x32xf32>
    %18 = arith.negf %17 : vector<1x32xf32>
    %19 = math.exp %18 : vector<1x32xf32>
    %cst_13 = arith.constant 1.000000e+00 : f32
    %20 = vector.broadcast %cst_13 : f32 to vector<1x32xf32>
    %21 = arith.addf %20, %19 : vector<1x32xf32>
    %22 = arith.divf %20, %21 : vector<1x32xf32>
    %23 = vector.shape_cast %22 : vector<1x32xf32> to vector<1x1x32xf32>
    %c0_14 = arith.constant 0 : index
    %c0_15 = arith.constant 0 : index
    %c0_16 = arith.constant 0 : index
    %24 = vector.load %arg7[%c0_14, %c0_15, %c0_16] : memref<1x1x32xf32, #tpu.memory_space<vmem>>, vector<1x1x32xf32>
    tpu.vector_store %arg7[%c0_14, %c0_15, %c0_16], %23 {strides = array<i32>} : memref<1x1x32xf32, #tpu.memory_space<vmem>>, vector<1x1x32xf32>,
    %c0_17 = arith.constant 0 : index
    %25 = memref.load %arg5[%c0_17] : memref<1xf32, #tpu.memory_space<smem>>
    %c0_18 = arith.constant 0 : index
    %c0_19 = arith.constant 0 : index
    %c0_20 = arith.constant 0 : index
    %26 = vector.load %arg1[%c0_18, %c0_19, %c0_20] : memref<1x32x256xf32, #tpu.memory_space<vmem>>, vector<1x32x256xf32>
    %c0_21 = arith.constant 0 : index
    %c0_22 = arith.constant 0 : index
    %c0_23 = arith.constant 0 : index
    %27 = vector.load %arg7[%c0_21, %c0_22, %c0_23] : memref<1x1x32xf32, #tpu.memory_space<vmem>>, vector<1x1x32xf32>
    %28 = vector.shape_cast %27 : vector<1x1x32xf32> to vector<1x32xf32>
    %29 = vector.shape_cast %28 : vector<1x32xf32> to vector<1x32x1xf32>
    %30 = vector.broadcast %29 : vector<1x32x1xf32> to vector<1x32x256xf32>
    %31 = arith.mulf %26, %30 : vector<1x32x256xf32>
    %32 = vector.extract_strided_slice %31 {offsets = [0, 0, 0], sizes = [1, 8, 256], strides = [1, 1, 1]} : vector<1x32x256xf32> to vector<1x8x256xf32>
    %33 = vector.extract_strided_slice %31 {offsets = [0, 8, 0], sizes = [1, 8, 256], strides = [1, 1, 1]} : vector<1x32x256xf32> to vector<1x8x256xf32>
    %34 = arith.maximumf %32, %33 : vector<1x8x256xf32>
    %35 = arith.addf %32, %33 : vector<1x8x256xf32>
    %36 = vector.extract_strided_slice %31 {offsets = [0, 16, 0], sizes = [1, 8, 256], strides = [1, 1, 1]} : vector<1x32x256xf32> to vector<1x8x256xf32>
    %37 = arith.maximumf %34, %36 : vector<1x8x256xf32>
    %38 = arith.addf %35, %36 : vector<1x8x256xf32>
    %39 = vector.extract_strided_slice %31 {offsets = [0, 24, 0], sizes = [1, 8, 256], strides = [1, 1, 1]} : vector<1x32x256xf32> to vector<1x8x256xf32>
    %40 = arith.maximumf %37, %39 : vector<1x8x256xf32>
    %41 = arith.addf %38, %39 : vector<1x8x256xf32>
    %cst_24 = arith.constant dense<0xFF800000> : vector<1x256xf32>
    %42 = vector.multi_reduction <maximumf>, %40, %cst_24 [1] : vector<1x8x256xf32> to vector<1x256xf32>
    %cst_25 = arith.constant dense<0.000000e+00> : vector<1x256xf32>
    %43 = vector.multi_reduction <add>, %41, %cst_25 [1] : vector<1x8x256xf32> to vector<1x256xf32>
    %cst_26 = arith.constant 3.125000e-02 : f32
    %44 = vector.broadcast %cst_26 : f32 to vector<1x256xf32>
    %45 = arith.mulf %43, %44 : vector<1x256xf32>
    %46 = tpu.concatenate %42, %45 in 0 : vector<1x256xf32>, vector<1x256xf32> -> vector<2x256xf32>
    %cst_27 = arith.constant 0.000000e+00 : f32
    %47 = vector.broadcast %cst_27 : f32 to vector<2x256xf32>
    %c51_i32 = arith.constant 51 : i32
    %48 = tpu.dynamic_rotate %46 by %c51_i32 dim 1 : vector<2x256xf32>, i32 -> vector<2x256xf32>
    %c0_28 = arith.constant 0 : index
    %c0_29 = arith.constant 0 : index
    %c0_30 = arith.constant 0 : index
    %49 = vector.load %arg4[%c0_28, %c0_29, %c0_30] : memref<49x2x256xf32, #tpu.memory_space<vmem>>, vector<1x2x256xf32>
    %50 = vector.shape_cast %49 : vector<1x2x256xf32> to vector<2x256xf32>
    %51 = arith.mulf %48, %50 : vector<2x256xf32>
    %52 = arith.addf %47, %51 : vector<2x256xf32>
    %c50_i32 = arith.constant 50 : i32
    %53 = tpu.dynamic_rotate %46 by %c50_i32 dim 1 : vector<2x256xf32>, i32 -> vector<2x256xf32>
    %c1 = arith.constant 1 : index
    %c0_31 = arith.constant 0 : index
    %c0_32 = arith.constant 0 : index
    %54 = vector.load %arg4[%c1, %c0_31, %c0_32] : memref<49x2x256xf32, #tpu.memory_space<vmem>>, vector<1x2x256xf32>
    %55 = vector.shape_cast %54 : vector<1x2x256xf32> to vector<2x256xf32>
    %56 = arith.mulf %53, %55 : vector<2x256xf32>
    %57 = arith.addf %52, %56 : vector<2x256xf32>
    %c49_i32 = arith.constant 49 : i32
    %58 = tpu.dynamic_rotate %46 by %c49_i32 dim 1 : vector<2x256xf32>, i32 -> vector<2x256xf32>
    %c2 = arith.constant 2 : index
    %c0_33 = arith.constant 0 : index
    %c0_34 = arith.constant 0 : index
    %59 = vector.load %arg4[%c2, %c0_33, %c0_34] : memref<49x2x256xf32, #tpu.memory_space<vmem>>, vector<1x2x256xf32>
    %60 = vector.shape_cast %59 : vector<1x2x256xf32> to vector<2x256xf32>
    %61 = arith.mulf %58, %60 : vector<2x256xf32>
    %62 = arith.addf %57, %61 : vector<2x256xf32>
    %c48_i32 = arith.constant 48 : i32
    %63 = tpu.dynamic_rotate %46 by %c48_i32 dim 1 : vector<2x256xf32>, i32 -> vector<2x256xf32>
    %c3 = arith.constant 3 : index
    %c0_35 = arith.constant 0 : index
    %c0_36 = arith.constant 0 : index
    %64 = vector.load %arg4[%c3, %c0_35, %c0_36] : memref<49x2x256xf32, #tpu.memory_space<vmem>>, vector<1x2x256xf32>
    %65 = vector.shape_cast %64 : vector<1x2x256xf32> to vector<2x256xf32>
    %66 = arith.mulf %63, %65 : vector<2x256xf32>
    %67 = arith.addf %62, %66 : vector<2x256xf32>
    %c47_i32 = arith.constant 47 : i32
    %68 = tpu.dynamic_rotate %46 by %c47_i32 dim 1 : vector<2x256xf32>, i32 -> vector<2x256xf32>
    %c4 = arith.constant 4 : index
    %c0_37 = arith.constant 0 : index
    %c0_38 = arith.constant 0 : index
    %69 = vector.load %arg4[%c4, %c0_37, %c0_38] : memref<49x2x256xf32, #tpu.memory_space<vmem>>, vector<1x2x256xf32>
    %70 = vector.shape_cast %69 : vector<1x2x256xf32> to vector<2x256xf32>
    %71 = arith.mulf %68, %70 : vector<2x256xf32>
    %72 = arith.addf %67, %71 : vector<2x256xf32>
    %c46_i32 = arith.constant 46 : i32
    %73 = tpu.dynamic_rotate %46 by %c46_i32 dim 1 : vector<2x256xf32>, i32 -> vector<2x256xf32>
    %c5 = arith.constant 5 : index
    %c0_39 = arith.constant 0 : index
    %c0_40 = arith.constant 0 : index
    %74 = vector.load %arg4[%c5, %c0_39, %c0_40] : memref<49x2x256xf32, #tpu.memory_space<vmem>>, vector<1x2x256xf32>
    %75 = vector.shape_cast %74 : vector<1x2x256xf32> to vector<2x256xf32>
    %76 = arith.mulf %73, %75 : vector<2x256xf32>
    %77 = arith.addf %72, %76 : vector<2x256xf32>
    %c45_i32 = arith.constant 45 : i32
    %78 = tpu.dynamic_rotate %46 by %c45_i32 dim 1 : vector<2x256xf32>, i32 -> vector<2x256xf32>
    %c6 = arith.constant 6 : index
    %c0_41 = arith.constant 0 : index
    %c0_42 = arith.constant 0 : index
    %79 = vector.load %arg4[%c6, %c0_41, %c0_42] : memref<49x2x256xf32, #tpu.memory_space<vmem>>, vector<1x2x256xf32>
    %80 = vector.shape_cast %79 : vector<1x2x256xf32> to vector<2x256xf32>
    %81 = arith.mulf %78, %80 : vector<2x256xf32>
    %82 = arith.addf %77, %81 : vector<2x256xf32>
    %c35_i32 = arith.constant 35 : i32
    %83 = tpu.dynamic_rotate %46 by %c35_i32 dim 1 : vector<2x256xf32>, i32 -> vector<2x256xf32>
    %c7 = arith.constant 7 : index
    %c0_43 = arith.constant 0 : index
    %c0_44 = arith.constant 0 : index
    %84 = vector.load %arg4[%c7, %c0_43, %c0_44] : memref<49x2x256xf32, #tpu.memory_space<vmem>>, vector<1x2x256xf32>
    %85 = vector.shape_cast %84 : vector<1x2x256xf32> to vector<2x256xf32>
    %86 = arith.mulf %83, %85 : vector<2x256xf32>
    %87 = arith.addf %82, %86 : vector<2x256xf32>
    %c34_i32 = arith.constant 34 : i32
    %88 = tpu.dynamic_rotate %46 by %c34_i32 dim 1 : vector<2x256xf32>, i32 -> vector<2x256xf32>
    %c8 = arith.constant 8 : index
    %c0_45 = arith.constant 0 : index
    %c0_46 = arith.constant 0 : index
    %89 = vector.load %arg4[%c8, %c0_45, %c0_46] : memref<49x2x256xf32, #tpu.memory_space<vmem>>, vector<1x2x256xf32>
    %90 = vector.shape_cast %89 : vector<1x2x256xf32> to vector<2x256xf32>
    %91 = arith.mulf %88, %90 : vector<2x256xf32>
    %92 = arith.addf %87, %91 : vector<2x256xf32>
    %c33_i32 = arith.constant 33 : i32
    %93 = tpu.dynamic_rotate %46 by %c33_i32 dim 1 : vector<2x256xf32>, i32 -> vector<2x256xf32>
    %c9 = arith.constant 9 : index
    %c0_47 = arith.constant 0 : index
    %c0_48 = arith.constant 0 : index
    %94 = vector.load %arg4[%c9, %c0_47, %c0_48] : memref<49x2x256xf32, #tpu.memory_space<vmem>>, vector<1x2x256xf32>
    %95 = vector.shape_cast %94 : vector<1x2x256xf32> to vector<2x256xf32>
    %96 = arith.mulf %93, %95 : vector<2x256xf32>
    %97 = arith.addf %92, %96 : vector<2x256xf32>
    %c32_i32 = arith.constant 32 : i32
    %98 = tpu.dynamic_rotate %46 by %c32_i32 dim 1 : vector<2x256xf32>, i32 -> vector<2x256xf32>
    %c10 = arith.constant 10 : index
    %c0_49 = arith.constant 0 : index
    %c0_50 = arith.constant 0 : index
    %99 = vector.load %arg4[%c10, %c0_49, %c0_50] : memref<49x2x256xf32, #tpu.memory_space<vmem>>, vector<1x2x256xf32>
    %100 = vector.shape_cast %99 : vector<1x2x256xf32> to vector<2x256xf32>
    %101 = arith.mulf %98, %100 : vector<2x256xf32>
    %102 = arith.addf %97, %101 : vector<2x256xf32>
    %c31_i32 = arith.constant 31 : i32
    %103 = tpu.dynamic_rotate %46 by %c31_i32 dim 1 : vector<2x256xf32>, i32 -> vector<2x256xf32>
    %c11 = arith.constant 11 : index
    %c0_51 = arith.constant 0 : index
    %c0_52 = arith.constant 0 : index
    %104 = vector.load %arg4[%c11, %c0_51, %c0_52] : memref<49x2x256xf32, #tpu.memory_space<vmem>>, vector<1x2x256xf32>
    %105 = vector.shape_cast %104 : vector<1x2x256xf32> to vector<2x256xf32>
    %106 = arith.mulf %103, %105 : vector<2x256xf32>
    %107 = arith.addf %102, %106 : vector<2x256xf32>
    %c30_i32 = arith.constant 30 : i32
    %108 = tpu.dynamic_rotate %46 by %c30_i32 dim 1 : vector<2x256xf32>, i32 -> vector<2x256xf32>
    %c12 = arith.constant 12 : index
    %c0_53 = arith.constant 0 : index
    %c0_54 = arith.constant 0 : index
    %109 = vector.load %arg4[%c12, %c0_53, %c0_54] : memref<49x2x256xf32, #tpu.memory_space<vmem>>, vector<1x2x256xf32>
    %110 = vector.shape_cast %109 : vector<1x2x256xf32> to vector<2x256xf32>
    %111 = arith.mulf %108, %110 : vector<2x256xf32>
    %112 = arith.addf %107, %111 : vector<2x256xf32>
    %c29_i32 = arith.constant 29 : i32
    %113 = tpu.dynamic_rotate %46 by %c29_i32 dim 1 : vector<2x256xf32>, i32 -> vector<2x256xf32>
    %c13 = arith.constant 13 : index
    %c0_55 = arith.constant 0 : index
    %c0_56 = arith.constant 0 : index
    %114 = vector.load %arg4[%c13, %c0_55, %c0_56] : memref<49x2x256xf32, #tpu.memory_space<vmem>>, vector<1x2x256xf32>
    %115 = vector.shape_cast %114 : vector<1x2x256xf32> to vector<2x256xf32>
    %116 = arith.mulf %113, %115 : vector<2x256xf32>
    %117 = arith.addf %112, %116 : vector<2x256xf32>
    %c19_i32 = arith.constant 19 : i32
    %118 = tpu.dynamic_rotate %46 by %c19_i32 dim 1 : vector<2x256xf32>, i32 -> vector<2x256xf32>
    %c14 = arith.constant 14 : index
    %c0_57 = arith.constant 0 : index
    %c0_58 = arith.constant 0 : index
    %119 = vector.load %arg4[%c14, %c0_57, %c0_58] : memref<49x2x256xf32, #tpu.memory_space<vmem>>, vector<1x2x256xf32>
    %120 = vector.shape_cast %119 : vector<1x2x256xf32> to vector<2x256xf32>
    %121 = arith.mulf %118, %120 : vector<2x256xf32>
    %122 = arith.addf %117, %121 : vector<2x256xf32>
    %c18_i32 = arith.constant 18 : i32
    %123 = tpu.dynamic_rotate %46 by %c18_i32 dim 1 : vector<2x256xf32>, i32 -> vector<2x256xf32>
    %c15 = arith.constant 15 : index
    %c0_59 = arith.constant 0 : index
    %c0_60 = arith.constant 0 : index
    %124 = vector.load %arg4[%c15, %c0_59, %c0_60] : memref<49x2x256xf32, #tpu.memory_space<vmem>>, vector<1x2x256xf32>
    %125 = vector.shape_cast %124 : vector<1x2x256xf32> to vector<2x256xf32>
    %126 = arith.mulf %123, %125 : vector<2x256xf32>
    %127 = arith.addf %122, %126 : vector<2x256xf32>
    %c17_i32 = arith.constant 17 : i32
    %128 = tpu.dynamic_rotate %46 by %c17_i32 dim 1 : vector<2x256xf32>, i32 -> vector<2x256xf32>
    %c16 = arith.constant 16 : index
    %c0_61 = arith.constant 0 : index
    %c0_62 = arith.constant 0 : index
    %129 = vector.load %arg4[%c16, %c0_61, %c0_62] : memref<49x2x256xf32, #tpu.memory_space<vmem>>, vector<1x2x256xf32>
    %130 = vector.shape_cast %129 : vector<1x2x256xf32> to vector<2x256xf32>
    %131 = arith.mulf %128, %130 : vector<2x256xf32>
    %132 = arith.addf %127, %131 : vector<2x256xf32>
    %c16_i32 = arith.constant 16 : i32
    %133 = tpu.dynamic_rotate %46 by %c16_i32 dim 1 : vector<2x256xf32>, i32 -> vector<2x256xf32>
    %c17 = arith.constant 17 : index
    %c0_63 = arith.constant 0 : index
    %c0_64 = arith.constant 0 : index
    %134 = vector.load %arg4[%c17, %c0_63, %c0_64] : memref<49x2x256xf32, #tpu.memory_space<vmem>>, vector<1x2x256xf32>
    %135 = vector.shape_cast %134 : vector<1x2x256xf32> to vector<2x256xf32>
    %136 = arith.mulf %133, %135 : vector<2x256xf32>
    %137 = arith.addf %132, %136 : vector<2x256xf32>
    %c15_i32 = arith.constant 15 : i32
    %138 = tpu.dynamic_rotate %46 by %c15_i32 dim 1 : vector<2x256xf32>, i32 -> vector<2x256xf32>
    %c18 = arith.constant 18 : index
    %c0_65 = arith.constant 0 : index
    %c0_66 = arith.constant 0 : index
    %139 = vector.load %arg4[%c18, %c0_65, %c0_66] : memref<49x2x256xf32, #tpu.memory_space<vmem>>, vector<1x2x256xf32>
    %140 = vector.shape_cast %139 : vector<1x2x256xf32> to vector<2x256xf32>
    %141 = arith.mulf %138, %140 : vector<2x256xf32>
    %142 = arith.addf %137, %141 : vector<2x256xf32>
    %c14_i32 = arith.constant 14 : i32
    %143 = tpu.dynamic_rotate %46 by %c14_i32 dim 1 : vector<2x256xf32>, i32 -> vector<2x256xf32>
    %c19 = arith.constant 19 : index
    %c0_67 = arith.constant 0 : index
    %c0_68 = arith.constant 0 : index
    %144 = vector.load %arg4[%c19, %c0_67, %c0_68] : memref<49x2x256xf32, #tpu.memory_space<vmem>>, vector<1x2x256xf32>
    %145 = vector.shape_cast %144 : vector<1x2x256xf32> to vector<2x256xf32>
    %146 = arith.mulf %143, %145 : vector<2x256xf32>
    %147 = arith.addf %142, %146 : vector<2x256xf32>
    %c13_i32 = arith.constant 13 : i32
    %148 = tpu.dynamic_rotate %46 by %c13_i32 dim 1 : vector<2x256xf32>, i32 -> vector<2x256xf32>
    %c20 = arith.constant 20 : index
    %c0_69 = arith.constant 0 : index
    %c0_70 = arith.constant 0 : index
    %149 = vector.load %arg4[%c20, %c0_69, %c0_70] : memref<49x2x256xf32, #tpu.memory_space<vmem>>, vector<1x2x256xf32>
    %150 = vector.shape_cast %149 : vector<1x2x256xf32> to vector<2x256xf32>
    %151 = arith.mulf %148, %150 : vector<2x256xf32>
    %152 = arith.addf %147, %151 : vector<2x256xf32>
    %c3_i32 = arith.constant 3 : i32
    %153 = tpu.dynamic_rotate %46 by %c3_i32 dim 1 : vector<2x256xf32>, i32 -> vector<2x256xf32>
    %c21 = arith.constant 21 : index
    %c0_71 = arith.constant 0 : index
    %c0_72 = arith.constant 0 : index
    %154 = vector.load %arg4[%c21, %c0_71, %c0_72] : memref<49x2x256xf32, #tpu.memory_space<vmem>>, vector<1x2x256xf32>
    %155 = vector.shape_cast %154 : vector<1x2x256xf32> to vector<2x256xf32>
    %156 = arith.mulf %153, %155 : vector<2x256xf32>
    %157 = arith.addf %152, %156 : vector<2x256xf32>
    %c2_i32 = arith.constant 2 : i32
    %158 = tpu.dynamic_rotate %46 by %c2_i32 dim 1 : vector<2x256xf32>, i32 -> vector<2x256xf32>
    %c22 = arith.constant 22 : index
    %c0_73 = arith.constant 0 : index
    %c0_74 = arith.constant 0 : index
    %159 = vector.load %arg4[%c22, %c0_73, %c0_74] : memref<49x2x256xf32, #tpu.memory_space<vmem>>, vector<1x2x256xf32>
    %160 = vector.shape_cast %159 : vector<1x2x256xf32> to vector<2x256xf32>
    %161 = arith.mulf %158, %160 : vector<2x256xf32>
    %162 = arith.addf %157, %161 : vector<2x256xf32>
    %c1_i32 = arith.constant 1 : i32
    %163 = tpu.dynamic_rotate %46 by %c1_i32 dim 1 : vector<2x256xf32>, i32 -> vector<2x256xf32>
    %c23 = arith.constant 23 : index
    %c0_75 = arith.constant 0 : index
    %c0_76 = arith.constant 0 : index
    %164 = vector.load %arg4[%c23, %c0_75, %c0_76] : memref<49x2x256xf32, #tpu.memory_space<vmem>>, vector<1x2x256xf32>
    %165 = vector.shape_cast %164 : vector<1x2x256xf32> to vector<2x256xf32>
    %166 = arith.mulf %163, %165 : vector<2x256xf32>
    %167 = arith.addf %162, %166 : vector<2x256xf32>
    %c24 = arith.constant 24 : index
    %c0_77 = arith.constant 0 : index
    %c0_78 = arith.constant 0 : index
    %168 = vector.load %arg4[%c24, %c0_77, %c0_78] : memref<49x2x256xf32, #tpu.memory_space<vmem>>, vector<1x2x256xf32>
    %169 = vector.shape_cast %168 : vector<1x2x256xf32> to vector<2x256xf32>
    %170 = arith.mulf %46, %169 : vector<2x256xf32>
    %171 = arith.addf %167, %170 : vector<2x256xf32>
    %c255_i32 = arith.constant 255 : i32
    %172 = tpu.dynamic_rotate %46 by %c255_i32 dim 1 : vector<2x256xf32>, i32 -> vector<2x256xf32>
    %c25 = arith.constant 25 : index
    %c0_79 = arith.constant 0 : index
    %c0_80 = arith.constant 0 : index
    %173 = vector.load %arg4[%c25, %c0_79, %c0_80] : memref<49x2x256xf32, #tpu.memory_space<vmem>>, vector<1x2x256xf32>
    %174 = vector.shape_cast %173 : vector<1x2x256xf32> to vector<2x256xf32>
    %175 = arith.mulf %172, %174 : vector<2x256xf32>
    %176 = arith.addf %171, %175 : vector<2x256xf32>
    %c254_i32 = arith.constant 254 : i32
    %177 = tpu.dynamic_rotate %46 by %c254_i32 dim 1 : vector<2x256xf32>, i32 -> vector<2x256xf32>
    %c26 = arith.constant 26 : index
    %c0_81 = arith.constant 0 : index
    %c0_82 = arith.constant 0 : index
    %178 = vector.load %arg4[%c26, %c0_81, %c0_82] : memref<49x2x256xf32, #tpu.memory_space<vmem>>, vector<1x2x256xf32>
    %179 = vector.shape_cast %178 : vector<1x2x256xf32> to vector<2x256xf32>
    %180 = arith.mulf %177, %179 : vector<2x256xf32>
    %181 = arith.addf %176, %180 : vector<2x256xf32>
    %c253_i32 = arith.constant 253 : i32
    %182 = tpu.dynamic_rotate %46 by %c253_i32 dim 1 : vector<2x256xf32>, i32 -> vector<2x256xf32>
    %c27 = arith.constant 27 : index
    %c0_83 = arith.constant 0 : index
    %c0_84 = arith.constant 0 : index
    %183 = vector.load %arg4[%c27, %c0_83, %c0_84] : memref<49x2x256xf32, #tpu.memory_space<vmem>>, vector<1x2x256xf32>
    %184 = vector.shape_cast %183 : vector<1x2x256xf32> to vector<2x256xf32>
    %185 = arith.mulf %182, %184 : vector<2x256xf32>
    %186 = arith.addf %181, %185 : vector<2x256xf32>
    %c243_i32 = arith.constant 243 : i32
    %187 = tpu.dynamic_rotate %46 by %c243_i32 dim 1 : vector<2x256xf32>, i32 -> vector<2x256xf32>
    %c28 = arith.constant 28 : index
    %c0_85 = arith.constant 0 : index
    %c0_86 = arith.constant 0 : index
    %188 = vector.load %arg4[%c28, %c0_85, %c0_86] : memref<49x2x256xf32, #tpu.memory_space<vmem>>, vector<1x2x256xf32>
    %189 = vector.shape_cast %188 : vector<1x2x256xf32> to vector<2x256xf32>
    %190 = arith.mulf %187, %189 : vector<2x256xf32>
    %191 = arith.addf %186, %190 : vector<2x256xf32>
    %c242_i32 = arith.constant 242 : i32
    %192 = tpu.dynamic_rotate %46 by %c242_i32 dim 1 : vector<2x256xf32>, i32 -> vector<2x256xf32>
    %c29 = arith.constant 29 : index
    %c0_87 = arith.constant 0 : index
    %c0_88 = arith.constant 0 : index
    %193 = vector.load %arg4[%c29, %c0_87, %c0_88] : memref<49x2x256xf32, #tpu.memory_space<vmem>>, vector<1x2x256xf32>
    %194 = vector.shape_cast %193 : vector<1x2x256xf32> to vector<2x256xf32>
    %195 = arith.mulf %192, %194 : vector<2x256xf32>
    %196 = arith.addf %191, %195 : vector<2x256xf32>
    %c241_i32 = arith.constant 241 : i32
    %197 = tpu.dynamic_rotate %46 by %c241_i32 dim 1 : vector<2x256xf32>, i32 -> vector<2x256xf32>
    %c30 = arith.constant 30 : index
    %c0_89 = arith.constant 0 : index
    %c0_90 = arith.constant 0 : index
    %198 = vector.load %arg4[%c30, %c0_89, %c0_90] : memref<49x2x256xf32, #tpu.memory_space<vmem>>, vector<1x2x256xf32>
    %199 = vector.shape_cast %198 : vector<1x2x256xf32> to vector<2x256xf32>
    %200 = arith.mulf %197, %199 : vector<2x256xf32>
    %201 = arith.addf %196, %200 : vector<2x256xf32>
    %c240_i32 = arith.constant 240 : i32
    %202 = tpu.dynamic_rotate %46 by %c240_i32 dim 1 : vector<2x256xf32>, i32 -> vector<2x256xf32>
    %c31 = arith.constant 31 : index
    %c0_91 = arith.constant 0 : index
    %c0_92 = arith.constant 0 : index
    %203 = vector.load %arg4[%c31, %c0_91, %c0_92] : memref<49x2x256xf32, #tpu.memory_space<vmem>>, vector<1x2x256xf32>
    %204 = vector.shape_cast %203 : vector<1x2x256xf32> to vector<2x256xf32>
    %205 = arith.mulf %202, %204 : vector<2x256xf32>
    %206 = arith.addf %201, %205 : vector<2x256xf32>
    %c239_i32 = arith.constant 239 : i32
    %207 = tpu.dynamic_rotate %46 by %c239_i32 dim 1 : vector<2x256xf32>, i32 -> vector<2x256xf32>
    %c32 = arith.constant 32 : index
    %c0_93 = arith.constant 0 : index
    %c0_94 = arith.constant 0 : index
    %208 = vector.load %arg4[%c32, %c0_93, %c0_94] : memref<49x2x256xf32, #tpu.memory_space<vmem>>, vector<1x2x256xf32>
    %209 = vector.shape_cast %208 : vector<1x2x256xf32> to vector<2x256xf32>
    %210 = arith.mulf %207, %209 : vector<2x256xf32>
    %211 = arith.addf %206, %210 : vector<2x256xf32>
    %c238_i32 = arith.constant 238 : i32
    %212 = tpu.dynamic_rotate %46 by %c238_i32 dim 1 : vector<2x256xf32>, i32 -> vector<2x256xf32>
    %c33 = arith.constant 33 : index
    %c0_95 = arith.constant 0 : index
    %c0_96 = arith.constant 0 : index
    %213 = vector.load %arg4[%c33, %c0_95, %c0_96] : memref<49x2x256xf32, #tpu.memory_space<vmem>>, vector<1x2x256xf32>
    %214 = vector.shape_cast %213 : vector<1x2x256xf32> to vector<2x256xf32>
    %215 = arith.mulf %212, %214 : vector<2x256xf32>
    %216 = arith.addf %211, %215 : vector<2x256xf32>
    %c237_i32 = arith.constant 237 : i32
    %217 = tpu.dynamic_rotate %46 by %c237_i32 dim 1 : vector<2x256xf32>, i32 -> vector<2x256xf32>
    %c34 = arith.constant 34 : index
    %c0_97 = arith.constant 0 : index
    %c0_98 = arith.constant 0 : index
    %218 = vector.load %arg4[%c34, %c0_97, %c0_98] : memref<49x2x256xf32, #tpu.memory_space<vmem>>, vector<1x2x256xf32>
    %219 = vector.shape_cast %218 : vector<1x2x256xf32> to vector<2x256xf32>
    %220 = arith.mulf %217, %219 : vector<2x256xf32>
    %221 = arith.addf %216, %220 : vector<2x256xf32>
    %c227_i32 = arith.constant 227 : i32
    %222 = tpu.dynamic_rotate %46 by %c227_i32 dim 1 : vector<2x256xf32>, i32 -> vector<2x256xf32>
    %c35 = arith.constant 35 : index
    %c0_99 = arith.constant 0 : index
    %c0_100 = arith.constant 0 : index
    %223 = vector.load %arg4[%c35, %c0_99, %c0_100] : memref<49x2x256xf32, #tpu.memory_space<vmem>>, vector<1x2x256xf32>
    %224 = vector.shape_cast %223 : vector<1x2x256xf32> to vector<2x256xf32>
    %225 = arith.mulf %222, %224 : vector<2x256xf32>
    %226 = arith.addf %221, %225 : vector<2x256xf32>
    %c226_i32 = arith.constant 226 : i32
    %227 = tpu.dynamic_rotate %46 by %c226_i32 dim 1 : vector<2x256xf32>, i32 -> vector<2x256xf32>
    %c36 = arith.constant 36 : index
    %c0_101 = arith.constant 0 : index
    %c0_102 = arith.constant 0 : index
    %228 = vector.load %arg4[%c36, %c0_101, %c0_102] : memref<49x2x256xf32, #tpu.memory_space<vmem>>, vector<1x2x256xf32>
    %229 = vector.shape_cast %228 : vector<1x2x256xf32> to vector<2x256xf32>
    %230 = arith.mulf %227, %229 : vector<2x256xf32>
    %231 = arith.addf %226, %230 : vector<2x256xf32>
    %c225_i32 = arith.constant 225 : i32
    %232 = tpu.dynamic_rotate %46 by %c225_i32 dim 1 : vector<2x256xf32>, i32 -> vector<2x256xf32>
    %c37 = arith.constant 37 : index
    %c0_103 = arith.constant 0 : index
    %c0_104 = arith.constant 0 : index
    %233 = vector.load %arg4[%c37, %c0_103, %c0_104] : memref<49x2x256xf32, #tpu.memory_space<vmem>>, vector<1x2x256xf32>
    %234 = vector.shape_cast %233 : vector<1x2x256xf32> to vector<2x256xf32>
    %235 = arith.mulf %232, %234 : vector<2x256xf32>
    %236 = arith.addf %231, %235 : vector<2x256xf32>
    %c224_i32 = arith.constant 224 : i32
    %237 = tpu.dynamic_rotate %46 by %c224_i32 dim 1 : vector<2x256xf32>, i32 -> vector<2x256xf32>
    %c38 = arith.constant 38 : index
    %c0_105 = arith.constant 0 : index
    %c0_106 = arith.constant 0 : index
    %238 = vector.load %arg4[%c38, %c0_105, %c0_106] : memref<49x2x256xf32, #tpu.memory_space<vmem>>, vector<1x2x256xf32>
    %239 = vector.shape_cast %238 : vector<1x2x256xf32> to vector<2x256xf32>
    %240 = arith.mulf %237, %239 : vector<2x256xf32>
    %241 = arith.addf %236, %240 : vector<2x256xf32>
    %c223_i32 = arith.constant 223 : i32
    %242 = tpu.dynamic_rotate %46 by %c223_i32 dim 1 : vector<2x256xf32>, i32 -> vector<2x256xf32>
    %c39 = arith.constant 39 : index
    %c0_107 = arith.constant 0 : index
    %c0_108 = arith.constant 0 : index
    %243 = vector.load %arg4[%c39, %c0_107, %c0_108] : memref<49x2x256xf32, #tpu.memory_space<vmem>>, vector<1x2x256xf32>
    %244 = vector.shape_cast %243 : vector<1x2x256xf32> to vector<2x256xf32>
    %245 = arith.mulf %242, %244 : vector<2x256xf32>
    %246 = arith.addf %241, %245 : vector<2x256xf32>
    %c222_i32 = arith.constant 222 : i32
    %247 = tpu.dynamic_rotate %46 by %c222_i32 dim 1 : vector<2x256xf32>, i32 -> vector<2x256xf32>
    %c40 = arith.constant 40 : index
    %c0_109 = arith.constant 0 : index
    %c0_110 = arith.constant 0 : index
    %248 = vector.load %arg4[%c40, %c0_109, %c0_110] : memref<49x2x256xf32, #tpu.memory_space<vmem>>, vector<1x2x256xf32>
    %249 = vector.shape_cast %248 : vector<1x2x256xf32> to vector<2x256xf32>
    %250 = arith.mulf %247, %249 : vector<2x256xf32>
    %251 = arith.addf %246, %250 : vector<2x256xf32>
    %c221_i32 = arith.constant 221 : i32
    %252 = tpu.dynamic_rotate %46 by %c221_i32 dim 1 : vector<2x256xf32>, i32 -> vector<2x256xf32>
    %c41 = arith.constant 41 : index
    %c0_111 = arith.constant 0 : index
    %c0_112 = arith.constant 0 : index
    %253 = vector.load %arg4[%c41, %c0_111, %c0_112] : memref<49x2x256xf32, #tpu.memory_space<vmem>>, vector<1x2x256xf32>
    %254 = vector.shape_cast %253 : vector<1x2x256xf32> to vector<2x256xf32>
    %255 = arith.mulf %252, %254 : vector<2x256xf32>
    %256 = arith.addf %251, %255 : vector<2x256xf32>
    %c211_i32 = arith.constant 211 : i32
    %257 = tpu.dynamic_rotate %46 by %c211_i32 dim 1 : vector<2x256xf32>, i32 -> vector<2x256xf32>
    %c42 = arith.constant 42 : index
    %c0_113 = arith.constant 0 : index
    %c0_114 = arith.constant 0 : index
    %258 = vector.load %arg4[%c42, %c0_113, %c0_114] : memref<49x2x256xf32, #tpu.memory_space<vmem>>, vector<1x2x256xf32>
    %259 = vector.shape_cast %258 : vector<1x2x256xf32> to vector<2x256xf32>
    %260 = arith.mulf %257, %259 : vector<2x256xf32>
    %261 = arith.addf %256, %260 : vector<2x256xf32>
    %c210_i32 = arith.constant 210 : i32
    %262 = tpu.dynamic_rotate %46 by %c210_i32 dim 1 : vector<2x256xf32>, i32 -> vector<2x256xf32>
    %c43 = arith.constant 43 : index
    %c0_115 = arith.constant 0 : index
    %c0_116 = arith.constant 0 : index
    %263 = vector.load %arg4[%c43, %c0_115, %c0_116] : memref<49x2x256xf32, #tpu.memory_space<vmem>>, vector<1x2x256xf32>
    %264 = vector.shape_cast %263 : vector<1x2x256xf32> to vector<2x256xf32>
    %265 = arith.mulf %262, %264 : vector<2x256xf32>
    %266 = arith.addf %261, %265 : vector<2x256xf32>
    %c209_i32 = arith.constant 209 : i32
    %267 = tpu.dynamic_rotate %46 by %c209_i32 dim 1 : vector<2x256xf32>, i32 -> vector<2x256xf32>
    %c44 = arith.constant 44 : index
    %c0_117 = arith.constant 0 : index
    %c0_118 = arith.constant 0 : index
    %268 = vector.load %arg4[%c44, %c0_117, %c0_118] : memref<49x2x256xf32, #tpu.memory_space<vmem>>, vector<1x2x256xf32>
    %269 = vector.shape_cast %268 : vector<1x2x256xf32> to vector<2x256xf32>
    %270 = arith.mulf %267, %269 : vector<2x256xf32>
    %271 = arith.addf %266, %270 : vector<2x256xf32>
    %c208_i32 = arith.constant 208 : i32
    %272 = tpu.dynamic_rotate %46 by %c208_i32 dim 1 : vector<2x256xf32>, i32 -> vector<2x256xf32>
    %c45 = arith.constant 45 : index
    %c0_119 = arith.constant 0 : index
    %c0_120 = arith.constant 0 : index
    %273 = vector.load %arg4[%c45, %c0_119, %c0_120] : memref<49x2x256xf32, #tpu.memory_space<vmem>>, vector<1x2x256xf32>
    %274 = vector.shape_cast %273 : vector<1x2x256xf32> to vector<2x256xf32>
    %275 = arith.mulf %272, %274 : vector<2x256xf32>
    %276 = arith.addf %271, %275 : vector<2x256xf32>
    %c207_i32 = arith.constant 207 : i32
    %277 = tpu.dynamic_rotate %46 by %c207_i32 dim 1 : vector<2x256xf32>, i32 -> vector<2x256xf32>
    %c46 = arith.constant 46 : index
    %c0_121 = arith.constant 0 : index
    %c0_122 = arith.constant 0 : index
    %278 = vector.load %arg4[%c46, %c0_121, %c0_122] : memref<49x2x256xf32, #tpu.memory_space<vmem>>, vector<1x2x256xf32>
    %279 = vector.shape_cast %278 : vector<1x2x256xf32> to vector<2x256xf32>
    %280 = arith.mulf %277, %279 : vector<2x256xf32>
    %281 = arith.addf %276, %280 : vector<2x256xf32>
    %c206_i32 = arith.constant 206 : i32
    %282 = tpu.dynamic_rotate %46 by %c206_i32 dim 1 : vector<2x256xf32>, i32 -> vector<2x256xf32>
    %c47 = arith.constant 47 : index
    %c0_123 = arith.constant 0 : index
    %c0_124 = arith.constant 0 : index
    %283 = vector.load %arg4[%c47, %c0_123, %c0_124] : memref<49x2x256xf32, #tpu.memory_space<vmem>>, vector<1x2x256xf32>
    %284 = vector.shape_cast %283 : vector<1x2x256xf32> to vector<2x256xf32>
    %285 = arith.mulf %282, %284 : vector<2x256xf32>
    %286 = arith.addf %281, %285 : vector<2x256xf32>
    %c205_i32 = arith.constant 205 : i32
    %287 = tpu.dynamic_rotate %46 by %c205_i32 dim 1 : vector<2x256xf32>, i32 -> vector<2x256xf32>
    %c48 = arith.constant 48 : index
    %c0_125 = arith.constant 0 : index
    %c0_126 = arith.constant 0 : index
    %288 = vector.load %arg4[%c48, %c0_125, %c0_126] : memref<49x2x256xf32, #tpu.memory_space<vmem>>, vector<1x2x256xf32>
    %289 = vector.shape_cast %288 : vector<1x2x256xf32> to vector<2x256xf32>
    %290 = arith.mulf %287, %289 : vector<2x256xf32>
    %291 = arith.addf %286, %290 : vector<2x256xf32>
    %292 = vector.extract_strided_slice %291 {offsets = [0, 0], sizes = [1, 256], strides = [1, 1]} : vector<2x256xf32> to vector<1x256xf32>
    %293 = vector.extract_strided_slice %291 {offsets = [1, 0], sizes = [1, 256], strides = [1, 1]} : vector<2x256xf32> to vector<1x256xf32>
    %294 = arith.addf %292, %293 : vector<1x256xf32>
    %295 = vector.broadcast %25 : f32 to vector<1x256xf32>
    %296 = arith.addf %294, %295 : vector<1x256xf32>
    %297 = arith.negf %296 : vector<1x256xf32>
    %298 = math.exp %297 : vector<1x256xf32>
    %cst_127 = arith.constant 1.000000e+00 : f32
    %299 = vector.broadcast %cst_127 : f32 to vector<1x256xf32>
    %300 = arith.addf %299, %298 : vector<1x256xf32>
    %301 = arith.divf %299, %300 : vector<1x256xf32>
    %302 = vector.shape_cast %301 : vector<1x256xf32> to vector<1x1x256xf32>
    %303 = vector.broadcast %302 : vector<1x1x256xf32> to vector<1x32x256xf32>
    %304 = arith.mulf %31, %303 : vector<1x32x256xf32>
    %305 = arith.addf %304, %26 : vector<1x32x256xf32>
    %c0_128 = arith.constant 0 : index
    %c0_129 = arith.constant 0 : index
    %c0_130 = arith.constant 0 : index
    %306 = vector.load %arg6[%c0_128, %c0_129, %c0_130] : memref<1x32x256xf32, #tpu.memory_space<vmem>>, vector<1x32x256xf32>
    tpu.vector_store %arg6[%c0_128, %c0_129, %c0_130], %305 {strides = array<i32>} : memref<1x32x256xf32, #tpu.memory_space<vmem>>, vector<1x32x256xf32>,
    return
  }
  func.func @transform_0(%arg0: i32) -> (i32, i32, i32) {
    %c0_i32 = arith.constant 0 : i32
    %c0_i32_0 = arith.constant 0 : i32
    %c0_i32_1 = arith.constant 0 : i32
    return %arg0, %c0_i32, %c0_i32_0 : i32, i32, i32
  }
  func.func @transform_1(%arg0: i32) -> (i32, i32) {
    %c0_i32 = arith.constant 0 : i32
    %c0_i32_0 = arith.constant 0 : i32
    %c0_i32_1 = arith.constant 0 : i32
    return %c0_i32, %c0_i32_0 : i32, i32
  }
  func.func @transform_2(%arg0: i32) -> (i32, i32) {
    %c0_i32 = arith.constant 0 : i32
    %c0_i32_0 = arith.constant 0 : i32
    %c0_i32_1 = arith.constant 0 : i32
    return %c0_i32, %c0_i32_0 : i32, i32
  }
  func.func @transform_3(%arg0: i32) -> (i32, i32, i32) {
    %c0_i32 = arith.constant 0 : i32
    %c0_i32_0 = arith.constant 0 : i32
    %c0_i32_1 = arith.constant 0 : i32
    %c0_i32_2 = arith.constant 0 : i32
    return %c0_i32, %c0_i32_0, %c0_i32_1 : i32, i32, i32
  }
  func.func @transform_4(%arg0: i32) -> i32 {
    %c0_i32 = arith.constant 0 : i32
    %c0_i32_0 = arith.constant 0 : i32
    return %c0_i32 : i32
  }
  func.func @transform_5(%arg0: i32) -> (i32, i32, i32) {
    %c0_i32 = arith.constant 0 : i32
    %c0_i32_0 = arith.constant 0 : i32
    %c0_i32_1 = arith.constant 0 : i32
    return %arg0, %c0_i32, %c0_i32_0 : i32, i32, i32
  }
}

</mosaic_0001>

<bundles_post_ra>
// kernel: cbam_pallas.1
= control target key start
LH: loop header
LB: loop body
LE: loop exit
PB: predicated region body
PF: predicated region fallthrough
CT: control target
= control target key end

     0   :  { %s2157_s20 = smov 0   ;;  %s2857_s0 = inlined_call_operand.vmem [shape: f32[2,32,256], index: 0, kind: input, shape index: {}]   ;;  %s2858_s1 = inlined_call_operand.vmem [shape: f32[32,8], index: 1, kind: input, shape index: {}]   ;;  %s2859_s2 = inlined_call_operand.vmem [shape: f32[8,32], index: 2, kind: input, shape index: {}]   ;;  %s2860_s3 = inlined_call_operand.vmem [shape: f32[49,2,256], index: 3, kind: input, shape index: {}]   ;;  %s2861_s4 = inlined_call_operand.<no memory space> [shape: f32[1], index: 4, kind: input, shape index: {}]   ;;  %s2862_s5 = inlined_call_operand.vmem [shape: f32[2,32,256], index: 5, kind: output, shape index: {}]  }
   0x1   :  { %10 = sst [smem:[#allocation3]] %s2861_s4 }
   0x2 LB: > { %s1841_s21 = sadd.s32 4294967295, %s2071_s20   ;;  %p1845_p0 = scmp.ge.s32.totalorder %s2071_s20, 1  ;;  %s2071_s20 = sphi %s2157_s20, %s16_s20  }
   0x3   : > { %p188_p1 = scmp.lt.s32.totalorder %s2071_s20, 3 }
   0x5   : > { %p189_p2 = pnand %p1845_p0, %p188_p1 }
   0x7   : > { %192 = sbr.rel (%p189_p2) target bundleno = 1138 (0x472), region = 40 }
   0xe   : > { %p216_p3 = scmp.lt.s32.totalorder %s1841_s21, 1  ;;  %v320_v16 = vld [vmem:[%s2858_s1] sm:$0xff]  ;;  %v321_v17 = vld [vmem:[%s2858_s1 + $0x8] sm:$0xff]  ;;  %v2073_v19 = vmov 0.0|0.0   ;;  %v322_v20 = vld [vmem:[%s2858_s1 + $0x10] sm:$0xff]  ;;  %vm2074_vm0 = vmmov 0   ;;  %v266_v24 = vlaneseq }
   0xf   : > { %v1981_v18 = vpack.c.bf16 %v321_v17, %v320_v16  ;;  %1980 = vmatprep.subr.bf16.mxu0 %v2073_v19  ;;  %v323_v21 = vld [vmem:[%s2858_s1 + $0x18] sm:$0xff]  ;;  %v2075_v23 = vmov 0.0   ;;  %vm277_vm1 = vcmask 130112   ;;  %vm284_vm2 = vcmask 195712   ;;  %v399_v61 = vld [vmem:[%s2859_s2] sm:$0xff]  ;;  %s2076_s10 = smov 51  }
  0x10   : > { %s2867_s21 = smov (!%p216_p3, %s1841_s21), 1  ;;  %v1984_v22 = vpack.c.bf16 %v323_v21, %v322_v20  ;;  %1972 = vmatprep.mubr.msk.f32.mxu0 %vm2074_vm0, %v2075_v23  ;;  %1975 = vmatprep.subr.mxu1 %v2075_v23  ;;  %v2227_v25 = vand.u32 127, %v266_v24  ;;  %v2230_v29 = vshrl.u32 %v266_v24, 7  ;;  %vm291_vm3 = vcmask 261312   ;;  %s2077_s11 = smov 50  }
  0x11   : > { %s1955_s4 = sshll.u32 %s2867_s21, 6  ;;  %1982 = vmatpush3.bf16.msra.mxu0 %v1981_v18  ;;  %1977 = vmatprep.mubr.msk.f32.mxu1 %vm2074_vm0, %v2075_v23  ;;  %vm318_vm4 = vcmask 1040384   ;;  %vm324_vm5 = vcmask 261120   ;;  %vm400_vm6 = vcmask 64512   ;;  %vm484_vm7 = vcmask 253952   ;;  %s2078_s12 = smov 49  }
  0x12   : > { %s2173_s24 = scalar_lea.vmem %s2857_s0, %s1955_s4  ;;  %1983 = vmatprep.subr.bf16.mxu0 %v2073_v19  ;;  %v272_v28 = vadd.s32 4294967288, %v2227_v25  ;;  %v286_v33 = vadd.s32 4294967272, %v2227_v25  ;;  %v279_v34 = vadd.s32 4294967280, %v2227_v25  ;;  %v270_v36 = vsub.s32 %v2227_v25, %v2230_v29  ;;  %1976 = vmatpush3.msra.mxu1 %v399_v61  ;;  %s2079_s13 = smov 48  }
  0x13   : > { %v2176_v0 = vld [vmem:[%s2173_s24 + $0x20] sm:$0xff]  ;;  %v2179_v1 = vld [vmem:[%s2173_s24 + $0x28] sm:$0xff]  ;;  %v2190_v5 = vld [vmem:[%s2173_s24 + $0x10] sm:$0xff]  ;;  %s2080_s14 = smov 47   ;;  %s2081_s15 = smov 46   ;;  %vm567_vm8 = vcmp.lt.s32.totalorder %v2227_v25, 51 }
  0x14   : > { %v2182_v2 = vld [vmem:[%s2173_s24] sm:$0xff]  ;;  %v240_v3 = vadd.f32 %v2179_v1, %v2176_v0  ;;  %v2187_v4 = vld [vmem:[%s2173_s24 + $0x8] sm:$0xff]  ;;  %v2193_v6 = vld [vmem:[%s2173_s24 + $0x18] sm:$0xff]  ;;  %v236_v15 = vmax.f32 %v2176_v0, %v2179_v1  ;;  %v275_v31 = vsub.s32 %v272_v28, %v2230_v29  ;;  %v289_v41 = vsub.s32 %v286_v33, %v2230_v29  ;;  %s2082_s16 = smov 45   ;;  %s2083_s17 = smov 35  }
  0x15   : > { %v238_v7 = vadd.f32 %v2187_v4, %v2182_v2  ;;  %v234_v8 = vmax.f32 %v2182_v2, %v2187_v4  ;;  %v239_v9 = vadd.f32 %v2193_v6, %v2190_v5  ;;  %v2202_v10 = vld [vmem:[%s2173_s24 + $0x30] sm:$0xff]  ;;  %v2205_v11 = vld [vmem:[%s2173_s24 + $0x38] sm:$0xff]  ;;  %v235_v13 = vmax.f32 %v2190_v5, %v2193_v6  ;;  %1985 = vmatpush3.bf16.msra.mxu0 %v1984_v22  ;;  %s2084_s18 = smov 34   ;;  %s2085_s19 = smov 33  }
  0x16   : > { %254 = vadd.xlane.f32.xlu1 %v240_v3  ;;  %v241_v12 = vadd.f32 %v2205_v11, %v2202_v10  ;;  %v237_v14 = vmax.f32 %v2202_v10, %v2205_v11  ;;  %v282_v43 = vsub.s32 %v279_v34, %v2230_v29  ;;  %s2086_s22 = smov 32   ;;  %s2087_s23 = smov 31   ;;  %vm590_vm9 = vcmp.lt.s32.totalorder %v2227_v25, 50 }
  0x17   : > { %250 = vadd.xlane.f32.xlu0 %v238_v7  ;;  %s2088_s25 = smov 30   ;;  %s2089_s26 = smov 29   ;;  %vm614_vm10 = vcmp.lt.s32.totalorder %v2227_v25, 49  ;;  %vm638_vm11 = vcmp.lt.s32.totalorder %v2227_v25, 48  ;;  %vm662_vm12 = vcmp.lt.s32.totalorder %v2227_v25, 47  ;;  %vm686_vm13 = vcmp.lt.s32.totalorder %v2227_v25, 46 }
  0x18   : > { %s2090_s27 = smov 19   ;;  %s2091_s28 = smov 18   ;;  %vm710_vm14 = vcmp.lt.s32.totalorder %v2227_v25, 45  ;;  %vm734_vm15 = vcmp.lt.s32.totalorder %v2227_v25, 35  ;;  %vm758_vm0 = vcmp.lt.s32.totalorder %v2227_v25, 34 }
  0x19   : > { %s2092_s29 = smov 17   ;;  %s2093_s30 = smov 16  }
  0x1a   : > { %242 = vmax.xlane.f32.xlu1 %v234_v8  ;;  %s2094_s6 = smov 15   ;;  %s2095_s7 = smov 14  }
  0x1b   : > { %252 = vadd.xlane.f32.xlu0 %v239_v9  ;;  %s2096_s8 = smov 13   ;;  %s2097_s9 = smov 3  }
  0x1e   : > { %256 = vadd.xlane.f32.xlu1 %v241_v12 }
  0x1f   : > { %244 = vmax.xlane.f32.xlu0 %v235_v13 }
  0x22   : > { %248 = vmax.xlane.f32.xlu1 %v237_v14 }
  0x23   : > { %246 = vmax.xlane.f32.xlu0 %v236_v15 }
  0xa3   : > { %v255_v26 = vpop.xlane.xlu1 %254 }
  0xa4   : > { %v251_v27 = vpop.xlane.xlu0 %250  ;;  %v260_v44 = vmul.f32 0.00390625, %v255_v26 }
  0xa5   : > { %v258_v37 = vmul.f32 0.00390625, %v251_v27 }
  0xa6   : > { %v310_v53 = vrot.slane %v260_v44, %v282_v43 }
  0xa7   : > { %v243_v30 = vpop.xlane.xlu1 %242  ;;  %v301_v45 = vrot.slane %v258_v37, %v270_v36 }
  0xa8   : > { %v253_v32 = vpop.xlane.xlu0 %252  ;;  %v271_v49 = vrot.slane %v243_v30, %v270_v36 }
  0xa9   : > { %v259_v35 = vmul.f32 0.00390625, %v253_v32 }
  0xab   : > { %v257_v38 = vpop.xlane.xlu1 %256  ;;  %v305_v39 = vrot.slane %v259_v35, %v275_v31 }
  0xac   : > { %v245_v40 = vpop.xlane.xlu0 %244  ;;  %v261_v42 = vmul.f32 0.00390625, %v257_v38 }
  0xad   : > { %v276_v46 = vrot.slane %v245_v40, %v275_v31  ;;  %v306_v48 = vsel %vm277_vm1, %v305_v39, %v301_v45 }
  0xae   : > { %v315_v50 = vrot.slane %v261_v42, %v289_v41  ;;  %v311_v57 = vsel %vm284_vm2, %v310_v53, %v306_v48 }
  0xaf   : > { %v249_v47 = vpop.xlane.xlu1 %248  ;;  %v278_v55 = vsel %vm277_vm1, %v276_v46, %v271_v49  ;;  %vm782_vm1 = vcmp.lt.s32.totalorder %v2227_v25, 33 }
  0xb0   : > { %v247_v51 = vpop.xlane.xlu0 %246  ;;  %v290_v52 = vrot.slane %v249_v47, %v289_v41  ;;  %v316_v59 = vsel %vm291_vm3, %v315_v50, %v311_v57 }
  0xb1   : > { %v283_v54 = vrot.slane %v247_v51, %v282_v43 }
  0xb3   : > { %v285_v56 = vsel %vm284_vm2, %v283_v54, %v278_v55  ;;  %vm806_vm2 = vcmp.lt.s32.totalorder %v2227_v25, 32 }
  0xb4   : > { %v292_v58 = vsel %vm291_vm3, %v290_v52, %v285_v56  ;;  %vm830_vm3 = vcmp.lt.s32.totalorder %v2227_v25, 31 }
  0xb5   : > { %v319_v60 = vsel %vm318_vm4, %v292_v58, %v316_v59 }
  0xb6   : > { %1973 = vmatmul.mubr.msk.f32.vlgmr.msra.gmra.mrb[0].mxu0 %vm324_vm5, %v319_v60  ;;  %vm878_vm5 = vcmp.lt.s32.totalorder %v2227_v25, 29 }
 0x189   : > { %v394_v62 = vpop.f32.mrb[0].mxu0 }
 0x18a   : > { %v398_v63 = vmax.f32 %v394_v62, 0.0  ;;  %v1974_v3 = vpop.f32.mrb[1].mxu0 }
 0x18b   : > { %v1854_v3 = vld.sshfl [vmem:[%s2860_s3] sm:$0x33 pattern:$0x76325410] }
 0x18c   : > { %1978 = vmatmul.mubr.msk.f32.vlgmr.msra.gmra.mrb[0].mxu1 %vm400_vm6, %v398_v63  ;;  %vm902_vm6 = vcmp.lt.s32.totalorder %v2227_v25, 19 }
 0x25f   : > { %v470_v7 = vpop.f32.mrb[0].mxu1 }
 0x260   : > { %v475_v8 = vrot.slane %v470_v7, 1  ;;  %v1979_v9 = vpop.f32.mrb[1].mxu1 }
 0x262   : > { %v477_v12 = vadd.f32 %v475_v8, %v470_v7  ;;  %v1856_v7 = vld.sshfl [vmem:[%s2860_s3 + $0x4] sm:$0x33 pattern:$0x76325410] }
 0x264   : > { %v1852_v13 = vmul.f32 -1.442695, %v477_v12 }
 0x266   : > { %2045 = vpow2.f32 %v1852_v13 }
 0x270   : > { %v2046_v14 = vpop.eup %2045 }
 0x271   : > { %v481_v15 = vadd.f32 1.0, %v2046_v14  ;;  %v579_v14 = vcombine.high %v1854_v3, %v1854_v3 }
 0x273   : > { %2047 = vrcp.f32 %v481_v15  ;;  %v603_v15 = vcombine.high %v1856_v7, %v1856_v7 }
 0x27d   : > { %v2048_v16 = vpop.eup %2047 }
 0x27e   : > { %485 = vst.msk [vmem:[#allocation2] sm:$0x1] %vm484_vm7, %v2048_v16  ;;  %v1858_v16 = vld.sshfl [vmem:[%s2860_s3 + $0x8] sm:$0x33 pattern:$0x76325410] }
 0x27f   : > { %vm926_vm7 = vcmp.lt.s32.totalorder %v2227_v25, 18 }
 0x285   : > { %v1853_v17 = vld [vmem:[#allocation2] ss:$0 sm:$0xff] }
 0x286   : > { %505 = vbcast.lane.b32.xlu1 %v1853_v17, 264  ;;  %501 = vbcast.lane.b32.xlu0 %v1853_v17, 256 }
 0x28a   : > { %509 = vbcast.lane.b32.xlu1 %v1853_v17, 272 }
 0x28e   : > { %513 = vbcast.lane.b32.xlu1 %v1853_v17, 280 }
 0x2f8   : > { %v506_v18 = vpop.permute.xlu1 %505  ;;  %v502_v19 = vpop.permute.xlu0 %501 }
 0x2f9   : > { %v2244_v20 = vmul.f32 %v506_v18, %v2190_v5  ;;  %v2247_v21 = vmul.f32 %v506_v18, %v2193_v6  ;;  %v2250_v22 = vmul.f32 %v502_v19, %v2182_v2  ;;  %v2253_v23 = vmul.f32 %v502_v19, %v2187_v4 }
 0x2fb   : > { %v523_v5 = vmax.f32 %v2250_v22, %v2244_v20  ;;  %v524_v6 = vmax.f32 %v2253_v23, %v2247_v21  ;;  %v525_v2 = vadd.f32 %v2244_v20, %v2250_v22  ;;  %v526_v4 = vadd.f32 %v2247_v21, %v2253_v23 }
 0x2fc   : > { %v510_v24 = vpop.permute.xlu1 %509 }
 0x2fd   : > { %v2256_v26 = vmul.f32 %v510_v24, %v2176_v0  ;;  %v2259_v27 = vmul.f32 %v510_v24, %v2179_v1 }
 0x2ff   : > { %v527_v28 = vmax.f32 %v523_v5, %v2256_v26  ;;  %v528_v0 = vmax.f32 %v524_v6, %v2259_v27  ;;  %v529_v1 = vadd.f32 %v525_v2, %v2256_v26  ;;  %v530_v31 = vadd.f32 %v526_v4, %v2259_v27 }
 0x300   : > { %v514_v30 = vpop.permute.xlu1 %513  ;;  %v627_v6 = vcombine.high %v1858_v16, %v1858_v16 }
 0x301   : > { %v2274_v32 = vmul.f32 %v514_v30, %v2202_v10  ;;  %v2277_v33 = vmul.f32 %v514_v30, %v2205_v11 }
 0x303   : > { %2864 = vst [vmem:[#allocation4_spill] sm:$0xff] %v2277_v33  ;;  %v531_v34 = vmax.f32 %v527_v28, %v2274_v32  ;;  %v532_v35 = vmax.f32 %v528_v0, %v2277_v33  ;;  %v533_v36 = vadd.f32 %v529_v1, %v2274_v32  ;;  %v534_v37 = vadd.f32 %v530_v31, %v2277_v33  ;;  %v1860_v0 = vld.sshfl [vmem:[%s2860_s3 + $0xc] sm:$0x33 pattern:$0x76325410] }
 0x305   : > { %v535_v38 = vrot.slane %v531_v34, 4  ;;  %v541_v39 = vrot.slane %v532_v35, 4  ;;  %v547_v40 = vrot.slane %v533_v36, 4  ;;  %v553_v41 = vrot.slane %v534_v37, 4 }
 0x307   : > { %v536_v42 = vmax.f32 %v531_v34, %v535_v38  ;;  %v542_v43 = vmax.f32 %v532_v35, %v541_v39  ;;  %v548_v44 = vadd.f32 %v547_v40, %v533_v36  ;;  %v554_v10 = vadd.f32 %v553_v41, %v534_v37  ;;  %v1862_v40 = vld.sshfl [vmem:[%s2860_s3 + $0x10] sm:$0x33 pattern:$0x76325410] }
 0x308   : > { %v651_v39 = vcombine.high %v1860_v0, %v1860_v0 }
 0x309   : > { %v537_v45 = vrot.slane %v536_v42, 2  ;;  %v543_v46 = vrot.slane %v542_v43, 2  ;;  %v549_v11 = vrot.slane %v548_v44, 2  ;;  %v555_v47 = vrot.slane %v554_v10, 2 }
 0x30b   : > { %v538_v48 = vmax.f32 %v536_v42, %v537_v45  ;;  %v544_v49 = vmax.f32 %v542_v43, %v543_v46  ;;  %v550_v50 = vadd.f32 %v549_v11, %v548_v44  ;;  %v556_v51 = vadd.f32 %v555_v47, %v554_v10 }
 0x30c   : > { %v675_v47 = vcombine.high %v1862_v40, %v1862_v40 }
 0x30d   : > { %v539_v52 = vrot.slane %v538_v48, 1  ;;  %v545_v53 = vrot.slane %v544_v49, 1  ;;  %v551_v54 = vrot.slane %v550_v50, 1  ;;  %v557_v55 = vrot.slane %v556_v51, 1 }
 0x30f   : > { %v552_v56 = vadd.f32 %v551_v54, %v550_v50  ;;  %v558_v57 = vadd.f32 %v557_v55, %v556_v51  ;;  %v540_v58 = vmax.f32 %v538_v48, %v539_v52  ;;  %v546_v59 = vmax.f32 %v544_v49, %v545_v53  ;;  %v1864_v48 = vld.sshfl [vmem:[%s2860_s3 + $0x14] sm:$0x33 pattern:$0x76325410] }
 0x311   : > { %v559_v60 = vmul.f32 0.03125, %v552_v56  ;;  %v560_v61 = vmul.f32 0.03125, %v558_v57  ;;  %v699_v57 = vcombine.high %v1864_v48, %v1864_v48 }
 0x313   : > { %v2284_v62 = vsel %vm318_vm4, %v540_v58, %v559_v60  ;;  %v2287_v63 = vsel %vm318_vm4, %v546_v59, %v560_v61  ;;  %v1866_v58 = vld.sshfl [vmem:[%s2860_s3 + $0x18] sm:$0x33 pattern:$0x76325410]  ;;  %vm854_vm4 = vcmp.lt.s32.totalorder %v2227_v25, 30 }
 0x314   : > { %565 = vrot.lane.b32.xlu1 %v2287_v63, %s2076_s10  ;;  %563 = vrot.lane.b32.xlu0 %v2284_v62, %s2076_s10  ;;  %s2098_s10 = smov 2  }
 0x318   : > { %588 = vrot.lane.b32.xlu1 %v2287_v63, %s2077_s11  ;;  %586 = vrot.lane.b32.xlu0 %v2284_v62, %s2077_s11  ;;  %s2099_s11 = smov 1  }
 0x31c   : > { %612 = vrot.lane.b32.xlu1 %v2287_v63, %s2078_s12  ;;  %610 = vrot.lane.b32.xlu0 %v2284_v62, %s2078_s12  ;;  %s2100_s12 = smov 127  }
 0x320   : > { %636 = vrot.lane.b32.xlu1 %v2287_v63, %s2079_s13  ;;  %634 = vrot.lane.b32.xlu0 %v2284_v62, %s2079_s13  ;;  %s2101_s13 = smov 126  }
 0x324   : > { %660 = vrot.lane.b32.xlu1 %v2287_v63, %s2080_s14  ;;  %658 = vrot.lane.b32.xlu0 %v2284_v62, %s2080_s14  ;;  %s2102_s14 = smov 125  }
 0x328   : > { %684 = vrot.lane.b32.xlu1 %v2287_v63, %s2081_s15  ;;  %682 = vrot.lane.b32.xlu0 %v2284_v62, %s2081_s15  ;;  %s2103_s15 = smov 115  }
 0x32c   : > { %708 = vrot.lane.b32.xlu1 %v2287_v63, %s2082_s16  ;;  %706 = vrot.lane.b32.xlu0 %v2284_v62, %s2082_s16  ;;  %s2104_s16 = smov 114  }
 0x330   : > { %732 = vrot.lane.b32.xlu1 %v2287_v63, %s2083_s17  ;;  %730 = vrot.lane.b32.xlu0 %v2284_v62, %s2083_s17  ;;  %s2111_s17 = smov 98  }
 0x334   : > { %756 = vrot.lane.b32.xlu1 %v2287_v63, %s2084_s18  ;;  %754 = vrot.lane.b32.xlu0 %v2284_v62, %s2084_s18  ;;  %s2120_s18 = smov 80  }
 0x338   : > { %780 = vrot.lane.b32.xlu1 %v2287_v63, %s2085_s19  ;;  %778 = vrot.lane.b32.xlu0 %v2284_v62, %s2085_s19  ;;  %s2121_s19 = smov 79  }
 0x33c   : > { %804 = vrot.lane.b32.xlu1 %v2287_v63, %s2086_s22  ;;  %802 = vrot.lane.b32.xlu0 %v2284_v62, %s2086_s22  ;;  %s2112_s22 = smov 97  }
 0x340   : > { %828 = vrot.lane.b32.xlu1 %v2287_v63, %s2087_s23  ;;  %826 = vrot.lane.b32.xlu0 %v2284_v62, %s2087_s23  ;;  %s2105_s23 = smov 113  }
 0x344   : > { %852 = vrot.lane.b32.xlu1 %v2287_v63, %s2088_s25  ;;  %850 = vrot.lane.b32.xlu0 %v2284_v62, %s2088_s25 }
 0x348   : > { %876 = vrot.lane.b32.xlu1 %v2287_v63, %s2089_s26  ;;  %874 = vrot.lane.b32.xlu0 %v2284_v62, %s2089_s26  ;;  %s2113_s26 = smov 96  }
 0x34c   : > { %900 = vrot.lane.b32.xlu1 %v2287_v63, %s2090_s27  ;;  %898 = vrot.lane.b32.xlu0 %v2284_v62, %s2090_s27  ;;  %s2106_s27 = smov 112  }
 0x350   : > { %924 = vrot.lane.b32.xlu1 %v2287_v63, %s2091_s28  ;;  %922 = vrot.lane.b32.xlu0 %v2284_v62, %s2091_s28 }
 0x354   : > { %948 = vrot.lane.b32.xlu1 %v2287_v63, %s2092_s29  ;;  %946 = vrot.lane.b32.xlu0 %v2284_v62, %s2092_s29  ;;  %s2114_s29 = smov 95  }
 0x358   : > { %972 = vrot.lane.b32.xlu1 %v2287_v63, %s2093_s30  ;;  %970 = vrot.lane.b32.xlu0 %v2284_v62, %s2093_s30  ;;  %s2107_s30 = smov 111  }
 0x35c   : > { %996 = vrot.lane.b32.xlu1 %v2287_v63, %s2094_s6  ;;  %994 = vrot.lane.b32.xlu0 %v2284_v62, %s2094_s6 }
 0x360   : > { %1020 = vrot.lane.b32.xlu1 %v2287_v63, %s2095_s7  ;;  %1018 = vrot.lane.b32.xlu0 %v2284_v62, %s2095_s7  ;;  %s2115_s7 = smov 94  }
 0x364   : > { %1044 = vrot.lane.b32.xlu1 %v2287_v63, %s2096_s8  ;;  %1042 = vrot.lane.b32.xlu0 %v2284_v62, %s2096_s8  ;;  %s2108_s8 = smov 110  }
 0x368   : > { %1068 = vrot.lane.b32.xlu1 %v2287_v63, %s2097_s9  ;;  %1066 = vrot.lane.b32.xlu0 %v2284_v62, %s2097_s9 }
 0x36c   : > { %1092 = vrot.lane.b32.xlu1 %v2287_v63, %s2098_s10  ;;  %1090 = vrot.lane.b32.xlu0 %v2284_v62, %s2098_s10  ;;  %s2116_s10 = smov 93  }
 0x370   : > { %1116 = vrot.lane.b32.xlu1 %v2287_v63, %s2099_s11  ;;  %1114 = vrot.lane.b32.xlu0 %v2284_v62, %s2099_s11  ;;  %s2109_s11 = smov 109  }
 0x374   : > { %1157 = vrot.lane.b32.xlu1 %v2287_v63, %s2100_s12  ;;  %1155 = vrot.lane.b32.xlu0 %v2284_v62, %s2100_s12 }
 0x378   : > { %1181 = vrot.lane.b32.xlu1 %v2287_v63, %s2101_s13  ;;  %1179 = vrot.lane.b32.xlu0 %v2284_v62, %s2101_s13  ;;  %s2117_s13 = smov 83  }
 0x37c   : > { %1205 = vrot.lane.b32.xlu1 %v2287_v63, %s2102_s14  ;;  %1203 = vrot.lane.b32.xlu0 %v2284_v62, %s2102_s14  ;;  %s2110_s14 = smov 99  }
 0x380   : > { %1229 = vrot.lane.b32.xlu1 %v2287_v63, %s2103_s15  ;;  %1227 = vrot.lane.b32.xlu0 %v2284_v62, %s2103_s15 }
 0x384   : > { %1253 = vrot.lane.b32.xlu1 %v2287_v63, %s2104_s16  ;;  %1251 = vrot.lane.b32.xlu0 %v2284_v62, %s2104_s16  ;;  %s2118_s16 = smov 82  }
 0x386   : > { %v566_v8 = vpop.permute.xlu1 %565  ;;  %v564_v9 = vpop.permute.xlu0 %563 }
 0x387   : > { %v568_v12 = vsel %vm567_vm8, %v564_v9, %v566_v8  ;;  %v569_v13 = vsel %vm567_vm8, %v566_v8, %v564_v9  ;;  %vm950_vm8 = vcmp.lt.s32.totalorder %v2227_v25, 17 }
 0x388   : > { %1277 = vrot.lane.b32.xlu1 %v2287_v63, %s2105_s23  ;;  %1275 = vrot.lane.b32.xlu0 %v2284_v62, %s2105_s23  ;;  %v582_v19 = vmul.f32 %v1854_v3, %v569_v13  ;;  %v583_v2 = vmul.f32 %v579_v14, %v568_v12  ;;  %v723_v13 = vcombine.high %v1866_v58, %v1866_v58  ;;  %v1868_v14 = vld.sshfl [vmem:[%s2860_s3 + $0x1c] sm:$0x33 pattern:$0x76325410]  ;;  %s2123_s23 = smov 77  }
 0x38a   : > { %v589_v17 = vpop.permute.xlu1 %588  ;;  %v587_v18 = vpop.permute.xlu0 %586 }
 0x38b   : > { %v591_v24 = vsel %vm590_vm9, %v587_v18, %v589_v17  ;;  %v592_v5 = vsel %vm590_vm9, %v589_v17, %v587_v18  ;;  %vm974_vm9 = vcmp.lt.s32.totalorder %v2227_v25, 16 }
 0x38c   : > { %v606_v4 = vmul.f32 %v1856_v7, %v592_v5  ;;  %v607_v28 = vmul.f32 %v603_v15, %v591_v24  ;;  %1301 = vrot.lane.b32.xlu1 %v2287_v63, %s2106_s27  ;;  %1299 = vrot.lane.b32.xlu0 %v2284_v62, %s2106_s27  ;;  %s486_s27 = sld [smem:[#allocation3]] }
 0x38e   : > { %v608_v30 = vadd.f32 %v606_v4, %v582_v19  ;;  %v609_v1 = vadd.f32 %v607_v28, %v583_v2  ;;  %v613_v31 = vpop.permute.xlu1 %612  ;;  %v611_v34 = vpop.permute.xlu0 %610  ;;  %v747_v2 = vcombine.high %v1868_v14, %v1868_v14  ;;  %v1870_v4 = vld.sshfl [vmem:[%s2860_s3 + $0x20] sm:$0x33 pattern:$0x76325410] }
 0x38f   : > { %v615_v35 = vsel %vm614_vm10, %v611_v34, %v613_v31  ;;  %v616_v36 = vsel %vm614_vm10, %v613_v31, %v611_v34  ;;  %vm998_vm10 = vcmp.lt.s32.totalorder %v2227_v25, 15 }
 0x390   : > { %v630_v37 = vmul.f32 %v1858_v16, %v616_v36  ;;  %v631_v38 = vmul.f32 %v627_v6, %v615_v35  ;;  %1325 = vrot.lane.b32.xlu1 %v2287_v63, %s2107_s30  ;;  %1323 = vrot.lane.b32.xlu0 %v2284_v62, %s2107_s30  ;;  %s225_s30 = scalar_lea.vmem %s2862_s5, %s1955_s4 }
 0x392   : > { %v632_v41 = vadd.f32 %v630_v37, %v608_v30  ;;  %v633_v42 = vadd.f32 %v631_v38, %v609_v1  ;;  %v637_v43 = vpop.permute.xlu1 %636  ;;  %v635_v44 = vpop.permute.xlu0 %634  ;;  %v771_v37 = vcombine.high %v1870_v4, %v1870_v4  ;;  %v1872_v38 = vld.sshfl [vmem:[%s2860_s3 + $0x24] sm:$0x33 pattern:$0x76325410] }
 0x393   : > { %v639_v10 = vsel %vm638_vm11, %v635_v44, %v637_v43  ;;  %v640_v45 = vsel %vm638_vm11, %v637_v43, %v635_v44  ;;  %vm1022_vm11 = vcmp.lt.s32.totalorder %v2227_v25, 14 }
 0x394   : > { %v654_v46 = vmul.f32 %v1860_v0, %v640_v45  ;;  %v655_v11 = vmul.f32 %v651_v39, %v639_v10  ;;  %1349 = vrot.lane.b32.xlu1 %v2287_v63, %s2108_s8  ;;  %1347 = vrot.lane.b32.xlu0 %v2284_v62, %s2108_s8 }
 0x396   : > { %v656_v49 = vadd.f32 %v654_v46, %v632_v41  ;;  %v657_v50 = vadd.f32 %v655_v11, %v633_v42  ;;  %v661_v51 = vpop.permute.xlu1 %660  ;;  %v659_v52 = vpop.permute.xlu0 %658  ;;  %v795_v46 = vcombine.high %v1872_v38, %v1872_v38  ;;  %v1874_v11 = vld.sshfl [vmem:[%s2860_s3 + $0x28] sm:$0x33 pattern:$0x76325410] }
 0x397   : > { %v663_v53 = vsel %vm662_vm12, %v659_v52, %v661_v51  ;;  %v664_v54 = vsel %vm662_vm12, %v661_v51, %v659_v52  ;;  %vm1046_vm12 = vcmp.lt.s32.totalorder %v2227_v25, 13 }
 0x398   : > { %v678_v55 = vmul.f32 %v1862_v40, %v664_v54  ;;  %v679_v56 = vmul.f32 %v675_v47, %v663_v53  ;;  %1373 = vrot.lane.b32.xlu1 %v2287_v63, %s2109_s11  ;;  %1371 = vrot.lane.b32.xlu0 %v2284_v62, %s2109_s11 }
 0x39a   : > { %v680_v59 = vadd.f32 %v678_v55, %v656_v49  ;;  %v681_v60 = vadd.f32 %v679_v56, %v657_v50  ;;  %v685_v61 = vpop.permute.xlu1 %684  ;;  %v683_v3 = vpop.permute.xlu0 %682  ;;  %v819_v55 = vcombine.high %v1874_v11, %v1874_v11  ;;  %v1876_v56 = vld.sshfl [vmem:[%s2860_s3 + $0x2c] sm:$0x33 pattern:$0x76325410] }
 0x39b   : > { %v687_v7 = vsel %vm686_vm13, %v683_v3, %v685_v61  ;;  %v688_v8 = vsel %vm686_vm13, %v685_v61, %v683_v3  ;;  %vm1070_vm13 = vcmp.lt.s32.totalorder %v2227_v25, 3 }
 0x39c   : > { %v702_v9 = vmul.f32 %v1864_v48, %v688_v8  ;;  %v703_v12 = vmul.f32 %v699_v57, %v687_v7  ;;  %1397 = vrot.lane.b32.xlu1 %v2287_v63, %s2110_s14  ;;  %1395 = vrot.lane.b32.xlu0 %v2284_v62, %s2110_s14 }
 0x39e   : > { %v704_v15 = vadd.f32 %v702_v9, %v680_v59  ;;  %v705_v16 = vadd.f32 %v703_v12, %v681_v60  ;;  %v709_v17 = vpop.permute.xlu1 %708  ;;  %v707_v18 = vpop.permute.xlu0 %706  ;;  %v843_v9 = vcombine.high %v1876_v56, %v1876_v56  ;;  %v1878_v12 = vld.sshfl [vmem:[%s2860_s3 + $0x30] sm:$0x33 pattern:$0x76325410] }
 0x39f   : > { %v711_v19 = vsel %vm710_vm14, %v707_v18, %v709_v17  ;;  %v712_v24 = vsel %vm710_vm14, %v709_v17, %v707_v18  ;;  %vm1094_vm14 = vcmp.lt.s32.totalorder %v2227_v25, 2 }
 0x3a0   : > { %v726_v5 = vmul.f32 %v1866_v58, %v712_v24  ;;  %v727_v6 = vmul.f32 %v723_v13, %v711_v19  ;;  %1421 = vrot.lane.b32.xlu1 %v2287_v63, %s2111_s17  ;;  %1419 = vrot.lane.b32.xlu0 %v2284_v62, %s2111_s17  ;;  %s2119_s17 = smov 81  }
 0x3a2   : > { %v728_v28 = vadd.f32 %v726_v5, %v704_v15  ;;  %v729_v0 = vadd.f32 %v727_v6, %v705_v16  ;;  %v733_v30 = vpop.permute.xlu1 %732  ;;  %v731_v1 = vpop.permute.xlu0 %730  ;;  %v867_v5 = vcombine.high %v1878_v12, %v1878_v12  ;;  %v1880_v6 = vld.sshfl [vmem:[%s2860_s3 + $0x34] sm:$0x33 pattern:$0x76325410] }
 0x3a3   : > { %v735_v31 = vsel %vm734_vm15, %v731_v1, %v733_v30  ;;  %v736_v34 = vsel %vm734_vm15, %v733_v30, %v731_v1  ;;  %vm1118_vm15 = vcmp.lt.s32.totalorder %v2227_v25, 1 }
 0x3a4   : > { %v750_v35 = vmul.f32 %v1868_v14, %v736_v34  ;;  %v751_v36 = vmul.f32 %v747_v2, %v735_v31  ;;  %1445 = vrot.lane.b32.xlu1 %v2287_v63, %s2112_s22  ;;  %1443 = vrot.lane.b32.xlu0 %v2284_v62, %s2112_s22  ;;  %s2122_s22 = smov 78  }
 0x3a6   : > { %v752_v39 = vadd.f32 %v750_v35, %v728_v28  ;;  %v753_v40 = vadd.f32 %v751_v36, %v729_v0  ;;  %v757_v41 = vpop.permute.xlu1 %756  ;;  %v755_v42 = vpop.permute.xlu0 %754  ;;  %v891_v35 = vcombine.high %v1880_v6, %v1880_v6  ;;  %v1882_v36 = vld.sshfl [vmem:[%s2860_s3 + $0x38] sm:$0x33 pattern:$0x76325410] }
 0x3a7   : > { %v759_v43 = vsel %vm758_vm0, %v755_v42, %v757_v41  ;;  %v760_v44 = vsel %vm758_vm0, %v757_v41, %v755_v42  ;;  %vm1159_vm0 = vcmp.lt.s32.totalorder %v2227_v25, 127 }
 0x3a8   : > { %v774_v10 = vmul.f32 %v1870_v4, %v760_v44  ;;  %v775_v45 = vmul.f32 %v771_v37, %v759_v43  ;;  %1469 = vrot.lane.b32.xlu1 %v2287_v63, %s2113_s26  ;;  %1467 = vrot.lane.b32.xlu0 %v2284_v62, %s2113_s26 }
 0x3aa   : > { %v776_v47 = vadd.f32 %v774_v10, %v752_v39  ;;  %v777_v48 = vadd.f32 %v775_v45, %v753_v40  ;;  %v781_v49 = vpop.permute.xlu1 %780  ;;  %v779_v50 = vpop.permute.xlu0 %778  ;;  %v915_v10 = vcombine.high %v1882_v36, %v1882_v36 }
 0x3ab   : > { %v783_v51 = vsel %vm782_vm1, %v779_v50, %v781_v49  ;;  %v784_v52 = vsel %vm782_vm1, %v781_v49, %v779_v50  ;;  %vm1183_vm1 = vcmp.lt.s32.totalorder %v2227_v25, 126 }
 0x3ac   : > { %v798_v53 = vmul.f32 %v1872_v38, %v784_v52  ;;  %v799_v54 = vmul.f32 %v795_v46, %v783_v51  ;;  %1493 = vrot.lane.b32.xlu1 %v2287_v63, %s2114_s29  ;;  %1491 = vrot.lane.b32.xlu0 %v2284_v62, %s2114_s29 }
 0x3ae   : > { %v800_v57 = vadd.f32 %v798_v53, %v776_v47  ;;  %v801_v58 = vadd.f32 %v799_v54, %v777_v48  ;;  %v805_v59 = vpop.permute.xlu1 %804  ;;  %v803_v60 = vpop.permute.xlu0 %802 }
 0x3af   : > { %v807_v61 = vsel %vm806_vm2, %v803_v60, %v805_v59  ;;  %v808_v3 = vsel %vm806_vm2, %v805_v59, %v803_v60  ;;  %vm1207_vm2 = vcmp.lt.s32.totalorder %v2227_v25, 125 }
 0x3b0   : > { %v822_v7 = vmul.f32 %v1874_v11, %v808_v3  ;;  %v823_v8 = vmul.f32 %v819_v55, %v807_v61  ;;  %1517 = vrot.lane.b32.xlu1 %v2287_v63, %s2115_s7  ;;  %1515 = vrot.lane.b32.xlu0 %v2284_v62, %s2115_s7 }
 0x3b2   : > { %v824_v13 = vadd.f32 %v822_v7, %v800_v57  ;;  %v825_v14 = vadd.f32 %v823_v8, %v801_v58  ;;  %v829_v15 = vpop.permute.xlu1 %828  ;;  %v827_v16 = vpop.permute.xlu0 %826 }
 0x3b3   : > { %v831_v17 = vsel %vm830_vm3, %v827_v16, %v829_v15  ;;  %v832_v18 = vsel %vm830_vm3, %v829_v15, %v827_v16  ;;  %vm1231_vm3 = vcmp.lt.s32.totalorder %v2227_v25, 115 }
 0x3b4   : > { %v846_v19 = vmul.f32 %v1876_v56, %v832_v18  ;;  %v847_v24 = vmul.f32 %v843_v9, %v831_v17  ;;  %1541 = vrot.lane.b32.xlu1 %v2287_v63, %s2116_s10  ;;  %1539 = vrot.lane.b32.xlu0 %v2284_v62, %s2116_s10 }
 0x3b6   : > { %v848_v2 = vadd.f32 %v846_v19, %v824_v13  ;;  %v849_v4 = vadd.f32 %v847_v24, %v825_v14  ;;  %v853_v28 = vpop.permute.xlu1 %852  ;;  %v851_v0 = vpop.permute.xlu0 %850 }
 0x3b7   : > { %v855_v30 = vsel %vm854_vm4, %v851_v0, %v853_v28  ;;  %v856_v1 = vsel %vm854_vm4, %v853_v28, %v851_v0  ;;  %v1884_v0 = vld.sshfl [vmem:[%s2860_s3 + $0x3c] sm:$0x33 pattern:$0x76325410]  ;;  %vm1255_vm4 = vcmp.lt.s32.totalorder %v2227_v25, 114 }
 0x3b8   : > { %v870_v31 = vmul.f32 %v1878_v12, %v856_v1  ;;  %v871_v34 = vmul.f32 %v867_v5, %v855_v30  ;;  %1565 = vrot.lane.b32.xlu1 %v2287_v63, %s2117_s13  ;;  %1563 = vrot.lane.b32.xlu0 %v2284_v62, %s2117_s13 }
 0x3ba   : > { %v872_v37 = vadd.f32 %v870_v31, %v848_v2  ;;  %v873_v38 = vadd.f32 %v871_v34, %v849_v4  ;;  %v877_v39 = vpop.permute.xlu1 %876  ;;  %v875_v40 = vpop.permute.xlu0 %874  ;;  %v1886_v31 = vld.sshfl [vmem:[%s2860_s3 + $0x40] sm:$0x33 pattern:$0x76325410]  ;;  %v939_v34 = vcombine.high %v1884_v0, %v1884_v0 }
 0x3bb   : > { %v879_v41 = vsel %vm878_vm5, %v875_v40, %v877_v39  ;;  %v880_v42 = vsel %vm878_vm5, %v877_v39, %v875_v40  ;;  %vm1279_vm5 = vcmp.lt.s32.totalorder %v2227_v25, 113 }
 0x3bc   : > { %v894_v43 = vmul.f32 %v1880_v6, %v880_v42  ;;  %v895_v44 = vmul.f32 %v891_v35, %v879_v41  ;;  %1589 = vrot.lane.b32.xlu1 %v2287_v63, %s2118_s16  ;;  %1587 = vrot.lane.b32.xlu0 %v2284_v62, %s2118_s16 }
 0x3be   : > { %v896_v45 = vadd.f32 %v894_v43, %v872_v37  ;;  %v897_v46 = vadd.f32 %v895_v44, %v873_v38  ;;  %v901_v11 = vpop.permute.xlu1 %900  ;;  %v899_v47 = vpop.permute.xlu0 %898  ;;  %v1888_v37 = vld.sshfl [vmem:[%s2860_s3 + $0x44] sm:$0x33 pattern:$0x76325410]  ;;  %v963_v38 = vcombine.high %v1886_v31, %v1886_v31 }
 0x3bf   : > { %v903_v48 = vsel %vm902_vm6, %v899_v47, %v901_v11  ;;  %v904_v49 = vsel %vm902_vm6, %v901_v11, %v899_v47  ;;  %v1890_v43 = vld.sshfl [vmem:[%s2860_s3 + $0x48] sm:$0x33 pattern:$0x76325410]  ;;  %vm1303_vm6 = vcmp.lt.s32.totalorder %v2227_v25, 112 }
 0x3c0   : > { %v918_v50 = vmul.f32 %v1882_v36, %v904_v49  ;;  %v919_v51 = vmul.f32 %v915_v10, %v903_v48  ;;  %1613 = vrot.lane.b32.xlu1 %v2287_v63, %s2119_s17  ;;  %1611 = vrot.lane.b32.xlu0 %v2284_v62, %s2119_s17 }
 0x3c2   : > { %v2437_v52 = vadd.f32 %v918_v50, %v896_v45  ;;  %v2439_v53 = vadd.f32 %v919_v51, %v897_v46  ;;  %v925_v54 = vpop.permute.xlu1 %924  ;;  %v923_v55 = vpop.permute.xlu0 %922  ;;  %v987_v45 = vcombine.high %v1888_v37, %v1888_v37  ;;  %v1892_v46 = vld.sshfl [vmem:[%s2860_s3 + $0x4c] sm:$0x33 pattern:$0x76325410]  ;;  %v1011_v50 = vcombine.high %v1890_v43, %v1890_v43 }
 0x3c3   : > { %v927_v35 = vsel %vm926_vm7, %v923_v55, %v925_v54  ;;  %v928_v36 = vsel %vm926_vm7, %v925_v54, %v923_v55  ;;  %v1894_v51 = vld.sshfl [vmem:[%s2860_s3 + $0x50] sm:$0x33 pattern:$0x76325410]  ;;  %vm1327_vm7 = vcmp.lt.s32.totalorder %v2227_v25, 111 }
 0x3c4   : > { %1637 = vrot.lane.b32.xlu1 %v2287_v63, %s2120_s18  ;;  %1635 = vrot.lane.b32.xlu0 %v2284_v62, %s2120_s18  ;;  %v942_v44 = vmul.f32 %v1884_v0, %v928_v36  ;;  %v943_v10 = vmul.f32 %v939_v34, %v927_v35  ;;  %v1035_v0 = vcombine.high %v1892_v46, %v1892_v46  ;;  %v1896_v35 = vld.sshfl [vmem:[%s2860_s3 + $0x54] sm:$0x33 pattern:$0x76325410] }
 0x3c6   : > { %v949_v56 = vpop.permute.xlu1 %948  ;;  %v947_v57 = vpop.permute.xlu0 %946 }
 0x3c7   : > { %v951_v41 = vsel %vm950_vm8, %v947_v57, %v949_v56  ;;  %v952_v42 = vsel %vm950_vm8, %v949_v56, %v947_v57  ;;  %vm1351_vm8 = vcmp.lt.s32.totalorder %v2227_v25, 110 }
 0x3c8   : > { %1661 = vrot.lane.b32.xlu1 %v2287_v63, %s2121_s19  ;;  %1659 = vrot.lane.b32.xlu0 %v2284_v62, %s2121_s19  ;;  %v966_v48 = vmul.f32 %v1886_v31, %v952_v42  ;;  %v967_v49 = vmul.f32 %v963_v38, %v951_v41  ;;  %v1059_v41 = vcombine.high %v1894_v51, %v1894_v51 }
 0x3ca   : > { %v973_v58 = vpop.permute.xlu1 %972  ;;  %v971_v59 = vpop.permute.xlu0 %970 }
 0x3cb   : > { %v975_v11 = vsel %vm974_vm9, %v971_v59, %v973_v58  ;;  %v976_v47 = vsel %vm974_vm9, %v973_v58, %v971_v59  ;;  %v944_v58 = vadd.f32 %v942_v44, %v2437_v52  ;;  %v945_v59 = vadd.f32 %v943_v10, %v2439_v53  ;;  %v1898_v52 = vld.sshfl [vmem:[%s2860_s3 + $0x58] sm:$0x33 pattern:$0x76325410] }
 0x3cc   : > { %1685 = vrot.lane.b32.xlu1 %v2287_v63, %s2122_s22  ;;  %1683 = vrot.lane.b32.xlu0 %v2284_v62, %s2122_s22  ;;  %v990_v31 = vmul.f32 %v1888_v37, %v976_v47  ;;  %v991_v34 = vmul.f32 %v987_v45, %v975_v11  ;;  %v1900_v47 = vld.sshfl [vmem:[%s2860_s3 + $0x5c] sm:$0x33 pattern:$0x76325410]  ;;  %vm1375_vm9 = vcmp.lt.s32.totalorder %v2227_v25, 109 }
 0x3cd   : > { %v968_v42 = vadd.f32 %v966_v48, %v944_v58 }
 0x3ce   : > { %v997_v60 = vpop.permute.xlu1 %996  ;;  %v995_v61 = vpop.permute.xlu0 %994 }
 0x3cf   : > { %v999_v56 = vsel %vm998_vm10, %v995_v61, %v997_v60  ;;  %v1000_v57 = vsel %vm998_vm10, %v997_v60, %v995_v61  ;;  %v969_v60 = vadd.f32 %v967_v49, %v945_v59  ;;  %v992_v44 = vadd.f32 %v990_v31, %v968_v42 }
 0x3d0   : > { %1709 = vrot.lane.b32.xlu1 %v2287_v63, %s2123_s23  ;;  %1707 = vrot.lane.b32.xlu0 %v2284_v62, %s2123_s23  ;;  %v1014_v61 = vmul.f32 %v1890_v43, %v1000_v57  ;;  %v1015_v33 = vmul.f32 %v1011_v50, %v999_v56  ;;  %v1083_v43 = vcombine.high %v1896_v35, %v1896_v35  ;;  %vm1399_vm10 = vcmp.lt.s32.totalorder %v2227_v25, 99 }
 0x3d1   : > { %v993_v10 = vadd.f32 %v991_v34, %v969_v60 }
 0x3d2   : > { %v1021_v3 = vpop.permute.xlu1 %1020  ;;  %v1019_v7 = vpop.permute.xlu0 %1018  ;;  %v1016_v49 = vadd.f32 %v1014_v61, %v992_v44 }
 0x3d3   : > { %v1023_v36 = vsel %vm1022_vm11, %v1019_v7, %v1021_v3  ;;  %v1024_v38 = vsel %vm1022_vm11, %v1021_v3, %v1019_v7  ;;  %vm1423_vm11 = vcmp.lt.s32.totalorder %v2227_v25, 98 }
 0x3d4   : > { %v1038_v45 = vmul.f32 %v1892_v46, %v1024_v38  ;;  %v1039_v11 = vmul.f32 %v1035_v0, %v1023_v36  ;;  %v1017_v46 = vadd.f32 %v1015_v33, %v993_v10 }
 0x3d6   : > { %v2449_v8 = vpop.permute.xlu1 %1044  ;;  %v2451_v9 = vpop.permute.xlu0 %1042  ;;  %v1040_v59 = vadd.f32 %v1038_v45, %v1016_v49  ;;  %v1041_v31 = vadd.f32 %v1039_v11, %v1017_v46  ;;  %v1906_v11 = vld.sshfl [vmem:[%s2860_s3 + $0x68] sm:$0x33 pattern:$0x76325410] }
 0x3d7   : > { %v1047_v3 = vsel %vm1046_vm12, %v2451_v9, %v2449_v8  ;;  %v1048_v7 = vsel %vm1046_vm12, %v2449_v8, %v2451_v9  ;;  %v1107_v9 = vcombine.high %v1898_v52, %v1898_v52  ;;  %vm1447_vm12 = vcmp.lt.s32.totalorder %v2227_v25, 97 }
 0x3d8   : > { %v1062_v50 = vmul.f32 %v1894_v51, %v1048_v7  ;;  %v1063_v56 = vmul.f32 %v1059_v41, %v1047_v3 }
 0x3da   : > { %v2453_v12 = vpop.permute.xlu1 %1068  ;;  %v2455_v13 = vpop.permute.xlu0 %1066  ;;  %v1064_v38 = vadd.f32 %v1062_v50, %v1040_v59  ;;  %v1065_v41 = vadd.f32 %v1063_v56, %v1041_v31 }
 0x3db   : > { %v1071_v48 = vsel %vm1070_vm13, %v2455_v13, %v2453_v12  ;;  %v1072_v8 = vsel %vm1070_vm13, %v2453_v12, %v2455_v13  ;;  %v1131_v13 = vcombine.high %v1900_v47, %v1900_v47  ;;  %vm1471_vm13 = vcmp.lt.s32.totalorder %v2227_v25, 96 }
 0x3dc   : > { %v1086_v33 = vmul.f32 %v1896_v35, %v1072_v8  ;;  %v1087_v51 = vmul.f32 %v1083_v43, %v1071_v48 }
 0x3de   : > { %v2457_v14 = vpop.permute.xlu1 %1092  ;;  %v2459_v15 = vpop.permute.xlu0 %1090  ;;  %v1089_v35 = vadd.f32 %v1087_v51, %v1065_v41 }
 0x3df   : > { %v1095_v58 = vsel %vm1094_vm14, %v2459_v15, %v2457_v14  ;;  %v1096_v12 = vsel %vm1094_vm14, %v2457_v14, %v2459_v15  ;;  %v1902_v14 = vld.sshfl [vmem:[%s2860_s3 + $0x60] sm:$0x33 pattern:$0x76325410]  ;;  %v1088_v15 = vadd.f32 %v1086_v33, %v1064_v38  ;;  %vm1495_vm14 = vcmp.lt.s32.totalorder %v2227_v25, 95 }
 0x3e0   : > { %v1110_v42 = vmul.f32 %v1898_v52, %v1096_v12  ;;  %v1111_v60 = vmul.f32 %v1107_v9, %v1095_v58  ;;  %v1148_v52 = vcombine.high %v1902_v14, %v1902_v14  ;;  %v1908_v9 = vld.sshfl [vmem:[%s2860_s3 + $0x6c] sm:$0x33 pattern:$0x76325410]  ;;  %v1151_v56 = vmul.f32 %v1902_v14, %v2284_v62 }
 0x3e1   : > { %v1196_v58 = vcombine.high %v1906_v11, %v1906_v11  ;;  %v1220_v33 = vcombine.high %v1908_v9, %v1908_v9  ;;  %v1910_v62 = vld.sshfl [vmem:[%s2860_s3 + $0x70] sm:$0x33 pattern:$0x76325410] }
 0x3e2   : > { %v2461_v16 = vpop.permute.xlu1 %1116  ;;  %v2463_v17 = vpop.permute.xlu0 %1114  ;;  %v1113_v44 = vadd.f32 %v1111_v60, %v1089_v35  ;;  %v1152_v50 = vmul.f32 %v1148_v52, %v2287_v63  ;;  %v1244_v41 = vcombine.high %v1910_v62, %v1910_v62 }
 0x3e3   : > { %v1119_v34 = vsel %vm1118_vm15, %v2463_v17, %v2461_v16  ;;  %v1120_v36 = vsel %vm1118_vm15, %v2461_v16, %v2463_v17  ;;  %v1904_v16 = vld.sshfl [vmem:[%s2860_s3 + $0x64] sm:$0x33 pattern:$0x76325410]  ;;  %v1112_v17 = vadd.f32 %v1110_v42, %v1088_v15  ;;  %vm1519_vm15 = vcmp.lt.s32.totalorder %v2227_v25, 94 }
 0x3e4   : > { %v1134_v7 = vmul.f32 %v1900_v47, %v1120_v36  ;;  %v1135_v43 = vmul.f32 %v1131_v13, %v1119_v34  ;;  %v1172_v8 = vcombine.high %v1904_v16, %v1904_v16  ;;  %v1912_v34 = vld.sshfl [vmem:[%s2860_s3 + $0x74] sm:$0x33 pattern:$0x76325410] }
 0x3e5   : > { %v1914_v42 = vld.sshfl [vmem:[%s2860_s3 + $0x78] sm:$0x33 pattern:$0x76325410] }
 0x3e6   : > { %v2465_v18 = vpop.permute.xlu1 %1157  ;;  %v2467_v19 = vpop.permute.xlu0 %1155  ;;  %v1136_v48 = vadd.f32 %v1134_v7, %v1112_v17  ;;  %v1137_v47 = vadd.f32 %v1135_v43, %v1113_v44  ;;  %v1916_v17 = vld.sshfl [vmem:[%s2860_s3 + $0x7c] sm:$0x33 pattern:$0x76325410] }
 0x3e7   : > { %v1160_v49 = vsel %vm1159_vm0, %v2467_v19, %v2465_v18  ;;  %v1161_v46 = vsel %vm1159_vm0, %v2465_v18, %v2467_v19  ;;  %vm1543_vm0 = vcmp.lt.s32.totalorder %v2227_v25, 93 }
 0x3e8   : > { %v1154_v63 = vadd.f32 %v1152_v50, %v1137_v47  ;;  %v1153_v18 = vadd.f32 %v1151_v56, %v1136_v48  ;;  %v1175_v19 = vmul.f32 %v1904_v16, %v1160_v49  ;;  %v1176_v51 = vmul.f32 %v1172_v8, %v1161_v46  ;;  %v1918_v8 = vld.sshfl [vmem:[%s2860_s3 + $0x80] sm:$0x33 pattern:$0x76325410] }
 0x3e9   : > { %v1316_v46 = vcombine.high %v1916_v17, %v1916_v17 }
 0x3ea   : > { %v2469_v24 = vpop.permute.xlu1 %1181  ;;  %v2471_v5 = vpop.permute.xlu0 %1179  ;;  %v1177_v35 = vadd.f32 %v1175_v19, %v1153_v18  ;;  %v1178_v7 = vadd.f32 %v1176_v51, %v1154_v63  ;;  %v1922_v51 = vld.sshfl [vmem:[%s2860_s3 + $0x88] sm:$0x33 pattern:$0x76325410] }
 0x3eb   : > { %v1184_v59 = vsel %vm1183_vm1, %v2471_v5, %v2469_v24  ;;  %v1185_v31 = vsel %vm1183_vm1, %v2469_v24, %v2471_v5  ;;  %vm1567_vm1 = vcmp.lt.s32.totalorder %v2227_v25, 83 }
 0x3ec   : > { %v1199_v5 = vmul.f32 %v1906_v11, %v1184_v59  ;;  %v1200_v38 = vmul.f32 %v1196_v58, %v1185_v31  ;;  %v1292_v11 = vcombine.high %v1914_v42, %v1914_v42  ;;  %v1920_v31 = vld.sshfl [vmem:[%s2860_s3 + $0x84] sm:$0x33 pattern:$0x76325410] }
 0x3ee   : > { %v2473_v6 = vpop.permute.xlu1 %1205  ;;  %v2475_v2 = vpop.permute.xlu0 %1203 }
 0x3ef   : > { %v1208_v36 = vsel %vm1207_vm2, %v2475_v2, %v2473_v6  ;;  %v1209_v24 = vsel %vm1207_vm2, %v2473_v6, %v2475_v2  ;;  %v1268_v2 = vcombine.high %v1912_v34, %v1912_v34  ;;  %vm1591_vm2 = vcmp.lt.s32.totalorder %v2227_v25, 82 }
 0x3f0   : > { %v1223_v43 = vmul.f32 %v1908_v9, %v1208_v36  ;;  %v1224_v16 = vmul.f32 %v1220_v33, %v1209_v24  ;;  %v1364_v24 = vcombine.high %v1920_v31, %v1920_v31 }
 0x3f2   : > { %v2477_v4 = vpop.permute.xlu1 %1229  ;;  %v2479_v28 = vpop.permute.xlu0 %1227 }
 0x3f3   : > { %v1232_v15 = vsel %vm1231_vm3, %v2479_v28, %v2477_v4  ;;  %v1233_v6 = vsel %vm1231_vm3, %v2477_v4, %v2479_v28  ;;  %v1201_v4 = vadd.f32 %v1199_v5, %v1177_v35  ;;  %v1202_v28 = vadd.f32 %v1200_v38, %v1178_v7 }
 0x3f4   : > { %v1247_v48 = vmul.f32 %v1910_v62, %v1232_v15  ;;  %v1248_v47 = vmul.f32 %v1244_v41, %v1233_v6  ;;  %v1924_v15 = vld.sshfl [vmem:[%s2860_s3 + $0x8c] sm:$0x33 pattern:$0x76325410]  ;;  %vm1615_vm3 = vcmp.lt.s32.totalorder %v2227_v25, 81 }
 0x3f5   : > { %v1225_v50 = vadd.f32 %v1223_v43, %v1201_v4  ;;  %v1226_v56 = vadd.f32 %v1224_v16, %v1202_v28  ;;  %v1926_v16 = vld.sshfl [vmem:[%s2860_s3 + $0x90] sm:$0x33 pattern:$0x76325410] }
 0x3f6   : > { %v2485_v30 = vpop.permute.xlu1 %1253  ;;  %v2487_v1 = vpop.permute.xlu0 %1251 }
 0x3f7   : > { %v1256_v44 = vsel %vm1255_vm4, %v2487_v1, %v2485_v30  ;;  %v1257_v52 = vsel %vm1255_vm4, %v2485_v30, %v2487_v1  ;;  %v1249_v62 = vadd.f32 %v1247_v48, %v1225_v50  ;;  %v1250_v63 = vadd.f32 %v1248_v47, %v1226_v56  ;;  %v1928_v47 = vld.sshfl [vmem:[%s2860_s3 + $0x94] sm:$0x33 pattern:$0x76325410] }
 0x3f8   : > { %v1271_v58 = vmul.f32 %v1912_v34, %v1256_v44  ;;  %v1272_v59 = vmul.f32 %v1268_v2, %v1257_v52  ;;  %v1412_v52 = vcombine.high %v1924_v15, %v1924_v15  ;;  %v1930_v56 = vld.sshfl [vmem:[%s2860_s3 + $0x98] sm:$0x33 pattern:$0x76325410]  ;;  %vm1639_vm4 = vcmp.lt.s32.totalorder %v2227_v25, 80 }
 0x3fa   : > { %v2497_v39 = vpop.permute.xlu1 %1277  ;;  %v2499_v40 = vpop.permute.xlu0 %1275  ;;  %v1273_v5 = vadd.f32 %v1271_v58, %v1249_v62  ;;  %v1274_v38 = vadd.f32 %v1272_v59, %v1250_v63  ;;  %v1932_v63 = vld.sshfl [vmem:[%s2860_s3 + $0x9c] sm:$0x33 pattern:$0x76325410] }
 0x3fb   : > { %v1280_v30 = vsel %vm1279_vm5, %v2499_v40, %v2497_v39  ;;  %v1281_v1 = vsel %vm1279_vm5, %v2497_v39, %v2499_v40  ;;  %v1340_v40 = vcombine.high %v1918_v8, %v1918_v8  ;;  %vm1663_vm5 = vcmp.lt.s32.totalorder %v2227_v25, 79 }
 0x3fc   : > { %v1295_v18 = vmul.f32 %v1914_v42, %v1280_v30  ;;  %v1296_v19 = vmul.f32 %v1292_v11, %v1281_v1 }
 0x3fe   : > { %v2512_v54 = vpop.permute.xlu1 %1301  ;;  %v2514_v55 = vpop.permute.xlu0 %1299  ;;  %v1297_v2 = vadd.f32 %v1295_v18, %v1273_v5  ;;  %v1298_v35 = vadd.f32 %v1296_v19, %v1274_v38 }
 0x3ff   : > { %v1304_v33 = vsel %vm1303_vm6, %v2514_v55, %v2512_v54  ;;  %v1305_v39 = vsel %vm1303_vm6, %v2512_v54, %v2514_v55  ;;  %vm1687_vm6 = vcmp.lt.s32.totalorder %v2227_v25, 78 }
 0x400   : > { %v1319_v41 = vmul.f32 %v1916_v17, %v1304_v33  ;;  %v1320_v42 = vmul.f32 %v1316_v46, %v1305_v39 }
 0x402   : > { %v2526_v53 = vpop.permute.xlu1 %1325  ;;  %v2528_v37 = vpop.permute.xlu0 %1323  ;;  %v1321_v11 = vadd.f32 %v1319_v41, %v1297_v2  ;;  %v1322_v4 = vadd.f32 %v1320_v42, %v1298_v35 }
 0x403   : > { %v1328_v54 = vsel %vm1327_vm7, %v2528_v37, %v2526_v53  ;;  %v1329_v55 = vsel %vm1327_vm7, %v2526_v53, %v2528_v37  ;;  %v1388_v37 = vcombine.high %v1922_v51, %v1922_v51  ;;  %vm1711_vm7 = vcmp.lt.s32.totalorder %v2227_v25, 77 }
 0x404   : > { %v1343_v7 = vmul.f32 %v1918_v8, %v1328_v54  ;;  %v1344_v43 = vmul.f32 %v1340_v40, %v1329_v55 }
 0x406   : > { %v2551_v57 = vpop.permute.xlu1 %1349  ;;  %v2553_v0 = vpop.permute.xlu0 %1347  ;;  %v1345_v30 = vadd.f32 %v1343_v7, %v1321_v11  ;;  %v1346_v1 = vadd.f32 %v1344_v43, %v1322_v4 }
 0x407   : > { %v1352_v6 = vsel %vm1351_vm8, %v2553_v0, %v2551_v57  ;;  %v1353_v53 = vsel %vm1351_vm8, %v2551_v57, %v2553_v0 }
 0x408   : > { %v1367_v28 = vmul.f32 %v1920_v31, %v1352_v6  ;;  %v1368_v48 = vmul.f32 %v1364_v24, %v1353_v53  ;;  %v1934_v24 = vld.sshfl [vmem:[%s2860_s3 + $0xa0] sm:$0x33 pattern:$0x76325410] }
 0x40a   : > { %v2567_v61 = vpop.permute.xlu1 %1373  ;;  %v2569_v3 = vpop.permute.xlu0 %1371  ;;  %v1369_v33 = vadd.f32 %v1367_v28, %v1345_v30  ;;  %v1370_v39 = vadd.f32 %v1368_v48, %v1346_v1 }
 0x40b   : > { %v1376_v57 = vsel %vm1375_vm9, %v2569_v3, %v2567_v61  ;;  %v1377_v0 = vsel %vm1375_vm9, %v2567_v61, %v2569_v3  ;;  %v1436_v3 = vcombine.high %v1926_v16, %v1926_v16 }
 0x40c   : > { %v1391_v46 = vmul.f32 %v1922_v51, %v1376_v57  ;;  %v1392_v50 = vmul.f32 %v1388_v37, %v1377_v0  ;;  %v1936_v37 = vld.sshfl [vmem:[%s2860_s3 + $0xa4] sm:$0x33 pattern:$0x76325410] }
 0x40d   : > { %v1938_v57 = vld.sshfl [vmem:[%s2860_s3 + $0xa8] sm:$0x33 pattern:$0x76325410] }
 0x40e   : > { %v2578_v10 = vpop.permute.xlu1 %1397  ;;  %v2580_v45 = vpop.permute.xlu0 %1395  ;;  %v1393_v19 = vadd.f32 %v1391_v46, %v1369_v33  ;;  %v1394_v51 = vadd.f32 %v1392_v50, %v1370_v39  ;;  %v1580_v30 = vcombine.high %v1938_v57, %v1938_v57 }
 0x40f   : > { %v1400_v8 = vsel %vm1399_vm10, %v2580_v45, %v2578_v10  ;;  %v1401_v61 = vsel %vm1399_vm10, %v2578_v10, %v2580_v45  ;;  %v1460_v45 = vcombine.high %v1928_v47, %v1928_v47 }
 0x410   : > { %v1415_v40 = vmul.f32 %v1924_v15, %v1400_v8  ;;  %v1416_v62 = vmul.f32 %v1412_v52, %v1401_v61  ;;  %v1940_v8 = vld.sshfl [vmem:[%s2860_s3 + $0xac] sm:$0x33 pattern:$0x76325410] }
 0x412   : > { %v2596_v12 = vpop.permute.xlu1 %1421  ;;  %v2598_v13 = vpop.permute.xlu0 %1419  ;;  %v1417_v42 = vadd.f32 %v1415_v40, %v1393_v19  ;;  %v1418_v15 = vadd.f32 %v1416_v62, %v1394_v51  ;;  %v1944_v62 = vld.sshfl [vmem:[%s2860_s3 + $0xb4] sm:$0x33 pattern:$0x76325410] }
 0x413   : > { %v1424_v31 = vsel %vm1423_vm11, %v2598_v13, %v2596_v12  ;;  %v1425_v10 = vsel %vm1423_vm11, %v2596_v12, %v2598_v13  ;;  %v1484_v13 = vcombine.high %v1930_v56, %v1930_v56 }
 0x414   : > { %v1439_v54 = vmul.f32 %v1926_v16, %v1424_v31  ;;  %v1440_v55 = vmul.f32 %v1436_v3, %v1425_v10 }
 0x416   : > { %v2619_v60 = vpop.permute.xlu1 %1445  ;;  %v2621_v14 = vpop.permute.xlu0 %1443  ;;  %v1441_v35 = vadd.f32 %v1439_v54, %v1417_v42  ;;  %v1442_v7 = vadd.f32 %v1440_v55, %v1418_v15 }
 0x417   : > { %v1448_v18 = vsel %vm1447_vm12, %v2621_v14, %v2619_v60  ;;  %v1449_v12 = vsel %vm1447_vm12, %v2619_v60, %v2621_v14  ;;  %v1508_v14 = vcombine.high %v1932_v63, %v1932_v63 }
 0x418   : > { %v1463_v6 = vmul.f32 %v1928_v47, %v1448_v18  ;;  %v1464_v53 = vmul.f32 %v1460_v45, %v1449_v12 }
 0x41a   : > { %v2643_v9 = vpop.permute.xlu1 %1469  ;;  %v2645_v49 = vpop.permute.xlu0 %1467  ;;  %v1465_v4 = vadd.f32 %v1463_v6, %v1441_v35  ;;  %v1466_v28 = vadd.f32 %v1464_v53, %v1442_v7  ;;  %v1948_v53 = vld.sshfl [vmem:[%s2860_s3 + $0xbc] sm:$0x33 pattern:$0x76325410] }
 0x41b   : > { %v1472_v41 = vsel %vm1471_vm13, %v2645_v49, %v2643_v9  ;;  %v1473_v60 = vsel %vm1471_vm13, %v2643_v9, %v2645_v49  ;;  %v1532_v49 = vcombine.high %v1934_v24, %v1934_v24 }
 0x41c   : > { %v1487_v43 = vmul.f32 %v1930_v56, %v1472_v41  ;;  %v1488_v16 = vmul.f32 %v1484_v13, %v1473_v60  ;;  %v1942_v56 = vld.sshfl [vmem:[%s2860_s3 + $0xb0] sm:$0x33 pattern:$0x76325410]  ;;  %v1652_v60 = vcombine.high %v1944_v62, %v1944_v62 }
 0x41d   : > { %v1628_v12 = vcombine.high %v1942_v56, %v1942_v56 }
 0x41e   : > { %v2671_v34 = vpop.permute.xlu1 %1493  ;;  %v2673_v36 = vpop.permute.xlu0 %1491 }
 0x41f   : > { %v1496_v2 = vsel %vm1495_vm14, %v2673_v36, %v2671_v34  ;;  %v1497_v9 = vsel %vm1495_vm14, %v2671_v34, %v2673_v36  ;;  %v1556_v36 = vcombine.high %v1936_v37, %v1936_v37 }
 0x420   : > { %v1511_v48 = vmul.f32 %v1932_v63, %v1496_v2  ;;  %v1512_v47 = vmul.f32 %v1508_v14, %v1497_v9 }
 0x422   : > { %v2699_v17 = vpop.permute.xlu1 %1517  ;;  %v2701_v44 = vpop.permute.xlu0 %1515 }
 0x423   : > { %v1520_v11 = vsel %vm1519_vm15, %v2701_v44, %v2699_v17  ;;  %v1521_v34 = vsel %vm1519_vm15, %v2699_v17, %v2701_v44  ;;  %v1489_v17 = vadd.f32 %v1487_v43, %v1465_v4  ;;  %v1490_v44 = vadd.f32 %v1488_v16, %v1466_v28 }
 0x424   : > { %v1535_v1 = vmul.f32 %v1934_v24, %v1520_v11  ;;  %v1536_v46 = vmul.f32 %v1532_v49, %v1521_v34  ;;  %v1700_v11 = vcombine.high %v1948_v53, %v1948_v53 }
 0x425   : > { %v1514_v33 = vadd.f32 %v1512_v47, %v1490_v44 }
 0x426   : > { %v1542_v58 = vpop.permute.xlu1 %1541  ;;  %v1540_v59 = vpop.permute.xlu0 %1539 }
 0x427   : > { %v1544_v61 = vsel %vm1543_vm0, %v1540_v59, %v1542_v58  ;;  %v1545_v3 = vsel %vm1543_vm0, %v1542_v58, %v1540_v59  ;;  %v1604_v58 = vcombine.high %v1940_v8, %v1940_v8  ;;  %v1513_v59 = vadd.f32 %v1511_v48, %v1489_v17  ;;  %v1950_v48 = vld.sshfl [vmem:[%s2860_s3 + $0xc0] sm:$0x33 pattern:$0x76325410] }
 0x428   : > { %v1559_v39 = vmul.f32 %v1936_v37, %v1544_v61  ;;  %v1560_v40 = vmul.f32 %v1556_v36, %v1545_v3  ;;  %v1538_v19 = vadd.f32 %v1536_v46, %v1514_v33  ;;  %v1724_v46 = vcombine.high %v1950_v48, %v1950_v48 }
 0x429   : > { %v1537_v13 = vadd.f32 %v1535_v1, %v1513_v59 }
 0x42a   : > { %v1566_v5 = vpop.permute.xlu1 %1565  ;;  %v1564_v38 = vpop.permute.xlu0 %1563  ;;  %v1562_v42 = vadd.f32 %v1560_v40, %v1538_v19 }
 0x42b   : > { %v1568_v10 = vsel %vm1567_vm1, %v1564_v38, %v1566_v5  ;;  %v1569_v45 = vsel %vm1567_vm1, %v1566_v5, %v1564_v38  ;;  %v1946_v5 = vld.sshfl [vmem:[%s2860_s3 + $0xb8] sm:$0x33 pattern:$0x76325410]  ;;  %v1561_v14 = vadd.f32 %v1559_v39, %v1537_v13 }
 0x42c   : > { %v1583_v51 = vmul.f32 %v1938_v57, %v1568_v10  ;;  %v1584_v54 = vmul.f32 %v1580_v30, %v1569_v45  ;;  %v1676_v9 = vcombine.high %v1946_v5, %v1946_v5 }
 0x42e   : > { %v1590_v0 = vpop.permute.xlu1 %1589  ;;  %v1588_v52 = vpop.permute.xlu0 %1587  ;;  %v1585_v49 = vadd.f32 %v1583_v51, %v1561_v14  ;;  %v1586_v35 = vadd.f32 %v1584_v54, %v1562_v42  ;;  %v1739_v54 = vstv %s486_s27 }
 0x42f   : > { %v1592_v63 = vsel %vm1591_vm2, %v1588_v52, %v1590_v0  ;;  %v1593_v18 = vsel %vm1591_vm2, %v1590_v0, %v1588_v52 }
 0x430   : > { %v1607_v15 = vmul.f32 %v1940_v8, %v1592_v63  ;;  %v1608_v6 = vmul.f32 %v1604_v58, %v1593_v18 }
 0x432   : > { %v1614_v50 = vpop.permute.xlu1 %1613  ;;  %v1612_v31 = vpop.permute.xlu0 %1611  ;;  %v1609_v34 = vadd.f32 %v1607_v15, %v1585_v49  ;;  %v1610_v36 = vadd.f32 %v1608_v6, %v1586_v35 }
 0x433   : > { %v1616_v38 = vsel %vm1615_vm3, %v1612_v31, %v1614_v50  ;;  %v1617_v41 = vsel %vm1615_vm3, %v1614_v50, %v1612_v31 }
 0x434   : > { %v1631_v7 = vmul.f32 %v1942_v56, %v1616_v38  ;;  %v1632_v43 = vmul.f32 %v1628_v12, %v1617_v41 }
 0x436   : > { %v1638_v55 = vpop.permute.xlu1 %1637  ;;  %v1636_v24 = vpop.permute.xlu0 %1635  ;;  %v1633_v47 = vadd.f32 %v1631_v7, %v1609_v34  ;;  %v1634_v8 = vadd.f32 %v1632_v43, %v1610_v36  ;;  %v2059_v34 = vld [vmem:[%s2173_s24 + $0x20] sm:$0xff] }
 0x437   : > { %v1640_v37 = vsel %vm1639_vm4, %v1636_v24, %v1638_v55  ;;  %v1641_v2 = vsel %vm1639_vm4, %v1638_v55, %v1636_v24 }
 0x438   : > { %v1655_v4 = vmul.f32 %v1944_v62, %v1640_v37  ;;  %v1656_v28 = vmul.f32 %v1652_v60, %v1641_v2 }
 0x43a   : > { %v1662_v16 = vpop.permute.xlu1 %1661  ;;  %v1660_v57 = vpop.permute.xlu0 %1659  ;;  %v1657_v50 = vadd.f32 %v1655_v4, %v1633_v47  ;;  %v1658_v56 = vadd.f32 %v1656_v28, %v1634_v8  ;;  %v2060_v4 = vld [vmem:[%s2173_s24 + $0x30] sm:$0xff]  ;;  %v2062_v8 = vld [vmem:[%s2173_s24 + $0x18] sm:$0xff] }
 0x43b   : > { %v1664_v0 = vsel %vm1663_vm5, %v1660_v57, %v1662_v16  ;;  %v1665_v52 = vsel %vm1663_vm5, %v1662_v16, %v1660_v57 }
 0x43c   : > { %v1679_v61 = vmul.f32 %v1946_v5, %v1664_v0  ;;  %v1680_v3 = vmul.f32 %v1676_v9, %v1665_v52  ;;  %v2865_v0 = vld [vmem:[#allocation4_spill] sm:$0xff] }
 0x43d   : > { %v2057_v52 = vld [vmem:[%s2173_s24] sm:$0xff] }
 0x43e   : > { %v1686_v30 = vpop.permute.xlu1 %1685  ;;  %v1684_v17 = vpop.permute.xlu0 %1683  ;;  %v1681_v45 = vadd.f32 %v1679_v61, %v1657_v50  ;;  %v1682_v58 = vadd.f32 %v1680_v3, %v1658_v56  ;;  %v2063_v61 = vld [vmem:[%s2173_s24 + $0x28] sm:$0xff] }
 0x43f   : > { %v1688_v44 = vsel %vm1687_vm6, %v1684_v17, %v1686_v30  ;;  %v1689_v1 = vsel %vm1687_vm6, %v1686_v30, %v1684_v17 }
 0x440   : > { %v1703_v31 = vmul.f32 %v1948_v53, %v1688_v44  ;;  %v1704_v10 = vmul.f32 %v1700_v11, %v1689_v1  ;;  %v1756_v53 = vsub.s32 0, %v2230_v29  ;;  %v2058_v11 = vld [vmem:[%s2173_s24 + $0x10] sm:$0xff] }
 0x442   : > { %v1710_v59 = vpop.permute.xlu1 %1709  ;;  %v1708_v33 = vpop.permute.xlu0 %1707  ;;  %v1705_v62 = vadd.f32 %v1703_v31, %v1681_v45  ;;  %v1706_v63 = vadd.f32 %v1704_v10, %v1682_v58 }
 0x443   : > { %v1712_v39 = vsel %vm1711_vm7, %v1708_v33, %v1710_v59  ;;  %v1713_v40 = vsel %vm1711_vm7, %v1710_v59, %v1708_v33 }
 0x444   : > { %v1727_v18 = vmul.f32 %v1950_v48, %v1712_v39  ;;  %v1728_v12 = vmul.f32 %v1724_v46, %v1713_v40  ;;  %v2061_v48 = vld [vmem:[%s2173_s24 + $0x8] sm:$0xff] }
 0x446   : > { %v1729_v13 = vadd.f32 %v1727_v18, %v1705_v62  ;;  %v1730_v19 = vadd.f32 %v1728_v12, %v1706_v63 }
 0x448   : > { %v1733_v51 = vrot.slane %v1729_v13, 1  ;;  %v1734_v25 = vrot.slane %v1730_v19, 1 }
 0x44a   : > { %v1737_v55 = vadd.f32 %v1733_v51, %v1729_v13  ;;  %v1738_v24 = vadd.f32 %v1734_v25, %v1730_v19 }
 0x44c   : > { %v1740_v5 = vadd.f32 %v1739_v54, %v1737_v55  ;;  %v1741_v38 = vadd.f32 %v1739_v54, %v1738_v24 }
 0x44e   : > { %v1951_v41 = vmul.f32 -1.442695, %v1740_v5  ;;  %v1952_v60 = vmul.f32 -1.442695, %v1741_v38 }
 0x450   : > { %2049 = vpow2.f32 %v1951_v41 }
 0x451   : > { %2051 = vpow2.f32 %v1952_v60 }
 0x45a   : > { %v2050_v14 = vpop.eup %2049 }
 0x45b   : > { %v2052_v42 = vpop.eup %2051  ;;  %v1748_v15 = vadd.f32 1.0, %v2050_v14 }
 0x45c   : > { %v1749_v6 = vadd.f32 1.0, %v2052_v42 }
 0x45d   : > { %2053 = vrcp.f32 %v1748_v15 }
 0x45e   : > { %2055 = vrcp.f32 %v1749_v6 }
 0x467   : > { %v2054_v37 = vpop.eup %2053 }
 0x468   : > { %v2056_v2 = vpop.eup %2055  ;;  %v1757_v9 = vrot.slane %v2054_v37, %v1756_v53 }
 0x469   : > { %v1761_v49 = vrot.slane %v2056_v2, %v1756_v53 }
 0x46a   : > { %v1762_v35 = vmul.f32 %v1757_v9, %v2250_v22  ;;  %v1764_v7 = vmul.f32 %v1757_v9, %v2244_v20  ;;  %v1766_v43 = vmul.f32 %v1757_v9, %v2256_v26  ;;  %v1768_v16 = vmul.f32 %v1757_v9, %v2274_v32 }
 0x46b   : > { %v1763_v29 = vmul.f32 %v1761_v49, %v2253_v23  ;;  %v1765_v57 = vmul.f32 %v1761_v49, %v2247_v21  ;;  %v1767_v22 = vmul.f32 %v1761_v49, %v2259_v27  ;;  %v1769_v20 = vmul.f32 %v1761_v49, %v2865_v0  ;;  %v2064_v21 = vld [vmem:[%s2173_s24 + $0x38] sm:$0xff] }
 0x46c   : > { %v1770_v26 = vadd.f32 %v2057_v52, %v1762_v35  ;;  %v1772_v32 = vadd.f32 %v2058_v11, %v1764_v7  ;;  %v1774_v36 = vadd.f32 %v2059_v34, %v1766_v43  ;;  %v1776_v28 = vadd.f32 %v2060_v4, %v1768_v16 }
 0x46d   : > { %v1771_v47 = vadd.f32 %v2061_v48, %v1763_v29  ;;  %v1773_v23 = vadd.f32 %v2062_v8, %v1765_v57  ;;  %v1775_v3 = vadd.f32 %v2063_v61, %v1767_v22  ;;  %v1777_v30 = vadd.f32 %v2064_v21, %v1769_v20 }
 0x46e   : > { %1778 = vst [vmem:[%s225_s30] sm:$0xff] %v1770_v26  ;;  %1780 = vst [vmem:[%s225_s30 + $0x10] sm:$0xff] %v1772_v32 }
 0x46f   : > { %1782 = vst [vmem:[%s225_s30 + $0x20] sm:$0xff] %v1774_v36  ;;  %1784 = vst [vmem:[%s225_s30 + $0x30] sm:$0xff] %v1776_v28 }
 0x470   : > { %1779 = vst [vmem:[%s225_s30 + $0x8] sm:$0xff] %v1771_v47  ;;  %1781 = vst [vmem:[%s225_s30 + $0x18] sm:$0xff] %v1773_v23 }
 0x471   : > { %1783 = vst [vmem:[%s225_s30 + $0x28] sm:$0xff] %v1775_v3  ;;  %1785 = vst [vmem:[%s225_s30 + $0x38] sm:$0xff] %v1777_v30 }
 0x472 PF: > { %s16_s20 = sadd.s32 1, %s2071_s20  }
 0x473   : > { %p13_p4 = scmp.ge.s32.totalorder %s16_s20, 4  }
 0x475   :  { %15 = sbr.rel (!%p13_p4) target bundleno = 2 (0x2), region = 118 }

</bundles_post_ra>
